<compile_context>
chip_gen: v7x
topology: tpu7x:2x2x1
jax: 0.10.0
libtpu: 0.0.40
codegen_flags: <defaults>
</compile_context>

<pallas_src>
import math

import jax
import jax.numpy as jnp
from jax.experimental import pallas as pl
from jax.experimental.pallas import tpu as pltpu

# ----------------------- hyper-parameters (constructor args of the module) ------------
INPUT_SIZE = 32          # d_model == lstm_input_size
NHEAD = 4                # attention heads (cannot affect seq-len-1 attention output)
NUM_LAYERS = 2           # transformer encoder layers
LSTM_HIDDEN1 = 32        # lstm_hidden_size
LSTM_HIDDEN2 = 16        # lstm_hidden_size2
LAYER_DIM = 1            # LSTM layer_dim
BIDIR = 2                # bidirectional_set = True
DIM_FF = 2048            # nn.TransformerEncoderLayer default dim_feedforward
LN_EPS = 1e-5            # PyTorch LayerNorm default eps
MAX_LEN = 21             # PositionalEncoding default max_len
SEQ_LEN = 8              # length of the input "sequence" (becomes the LSTM batch)
OUT_DIM = BIDIR * LSTM_HIDDEN2

# ----------------------- packed small-parameter slab layout (8-aligned rows) ----------
LANES = BIDIR * 4 * LSTM_HIDDEN1                              # 256 lanes
ROW_PE = 0
ROW_TLAYER0 = 8                                               # 8-aligned
ROWS_PER_TLAYER = ((INPUT_SIZE + 6 + 7) // 8) * 8             # 40 (8-aligned stride)
ROW_LSTM1_W = ROW_TLAYER0 + NUM_LAYERS * ROWS_PER_TLAYER      # 88
ROW_LSTM1_B = ROW_LSTM1_W + INPUT_SIZE                        # 120
ROW_LSTM2_W = ((ROW_LSTM1_B + 1 + 7) // 8) * 8                # 128
ROW_LSTM2_B = ROW_LSTM2_W + BIDIR * LSTM_HIDDEN1              # 192
SLAB_ROWS = ((ROW_LSTM2_B + 1 + 7) // 8) * 8                  # 200

MAX_TILE_ROWS = 512                 # cap per review: fits v7x 64 MiB VMEM, fills MXU
VMEM_LIMIT_BYTES = 48 * 1024 * 1024


def _round_up(n, m):
    return ((n + m - 1) // m) * m


# ----------------------------- shared forward math ------------------------------------
def _layer_norm(z, g, b):
    mu = jnp.mean(z, axis=-1, keepdims=True)
    var = jnp.mean(jnp.square(z - mu), axis=-1, keepdims=True)
    return (z - mu) * jax.lax.rsqrt(var + LN_EPS) * g + b


def _lstm_gates(g, hidden):
    # Single-timestep LSTM with zero (h0, c0).  PyTorch gate order: i, f, g, o.
    i = jax.nn.sigmoid(g[:, 0 * hidden:1 * hidden])
    # forget gate multiplies c0 == 0 -> drops out
    gc = jnp.tanh(g[:, 2 * hidden:3 * hidden])
    o = jax.nn.sigmoid(g[:, 3 * hidden:4 * hidden])
    return o * jnp.tanh(i * gc)


def _forward_math(x, slab, b1s, w1s, w2s):
    """Works on Pallas refs (inside the kernel) and on jnp arrays (pure-JAX reference).
    x: (T, D); slab: (SLAB_ROWS, LANES) f32; b1s: (NUM_LAYERS, DIM_FF) f32;
    w1s: (NUM_LAYERS, D, DIM_FF) bf16; w2s: (NUM_LAYERS, DIM_FF, D) bf16."""
    D, H1, H2 = INPUT_SIZE, LSTM_HIDDEN1, LSTM_HIDDEN2

    # positional encoding: only pe[0] is added (transformer sequence length == 1)
    y = x[...] + slab[ROW_PE:ROW_PE + 1, :D]

    # --- nn.TransformerEncoder (post-norm, relu, eval-mode dropout) ---
    for l in range(NUM_LAYERS):
        base = ROW_TLAYER0 + l * ROWS_PER_TLAYER
        w_attn = slab[base:base + D, :D]                  # fused Wv @ Wo (8-aligned start)
        b_attn = slab[base + D + 0:base + D + 1, :D]
        ln1_g = slab[base + D + 1:base + D + 2, :D]
        ln1_b = slab[base + D + 2:base + D + 3, :D]
        b2 = slab[base + D + 3:base + D + 4, :D]
        ln2_g = slab[base + D + 4:base + D + 5, :D]
        ln2_b = slab[base + D + 5:base + D + 6, :D]

        attn = jnp.dot(y, w_attn, preferred_element_type=jnp.float32) + b_attn
        y = _layer_norm(y + attn, ln1_g, ln1_b)

        h = jnp.dot(y.astype(jnp.bfloat16), w1s[l],
                    preferred_element_type=jnp.float32) + b1s[l:l + 1, :]
        h = jnp.maximum(h, 0.0)
        ff = jnp.dot(h.astype(jnp.bfloat16), w2s[l],
                     preferred_element_type=jnp.float32) + b2
        y = _layer_norm(y + ff, ln2_g, ln2_b)

    # --- bidirectional LSTM #1 (seq length 1): one fused matmul, slice per-direction ---
    wih1 = slab[ROW_LSTM1_W:ROW_LSTM1_W + D, :]                      # (D, 8*H1)
    bg1 = slab[ROW_LSTM1_B:ROW_LSTM1_B + 1, :]
    g1 = jnp.dot(y, wih1, preferred_element_type=jnp.float32) + bg1  # (T, 256)
    out1 = jnp.concatenate([_lstm_gates(g1[:, :4 * H1], H1),
                            _lstm_gates(g1[:, 4 * H1:], H1)], axis=-1)
    # dropout(p=0.5) -> identity in eval mode

    # --- bidirectional LSTM #2 ---
    wih2 = slab[ROW_LSTM2_W:ROW_LSTM2_W + BIDIR * H1, :BIDIR * 4 * H2]   # (64, 128)
    bg2 = slab[ROW_LSTM2_B:ROW_LSTM2_B + 1, :BIDIR * 4 * H2]
    g2 = jnp.dot(out1, wih2, preferred_element_type=jnp.float32) + bg2   # (T, 128)
    return jnp.concatenate([_lstm_gates(g2[:, :4 * H2], H2),
                            _lstm_gates(g2[:, 4 * H2:], H2)], axis=-1)


# ----------------------------- Pallas kernel + wrapper --------------------------------
def _kernel(x_ref, slab_ref, b1_ref, w1_ref, w2_ref, out_ref):
    out_ref[...] = _forward_math(x_ref, slab_ref, b1_ref, w1_ref, w2_ref)


def transformer_lstm_encoder(x, slab, b1s, w1s, w2s, *, max_tile_rows=MAX_TILE_ROWS):
    """x: (rows, INPUT_SIZE) f32 -> (rows, 1, 2*LSTM_HIDDEN2) f32 (PyTorch output shape)."""
    n, d = x.shape
    assert d == INPUT_SIZE

    # Row-blocked grid: every op is row-wise independent, so large row blocks fill the
    # MXU and amortize per-step pipeline overhead; tiny inputs run as a single block.
    tile = min(max_tile_rows, _round_up(n, 8))
    padded = _round_up(n, tile)
    if padded != n:
        x = jnp.pad(x, ((0, padded - n), (0, 0)))
    grid = (padded // tile,)

    out2d = pl.pallas_call(
        _kernel,
        out_shape=jax.ShapeDtypeStruct((padded, OUT_DIM), jnp.float32),
        grid_spec=pltpu.PrefetchScalarGridSpec(
            num_scalar_prefetch=0,
            grid=grid,
            in_specs=[
                # row-blocked activations
                pl.BlockSpec((tile, INPUT_SIZE), lambda i: (i, 0)),
                # parameters: constant block index -> DMA'd once, VMEM-resident
                pl.BlockSpec((SLAB_ROWS, LANES), lambda i: (0, 0)),
                pl.BlockSpec((NUM_LAYERS, DIM_FF), lambda i: (0, 0)),
                pl.BlockSpec((NUM_LAYERS, INPUT_SIZE, DIM_FF), lambda i: (0, 0, 0)),
                pl.BlockSpec((NUM_LAYERS, DIM_FF, INPUT_SIZE), lambda i: (0, 0, 0)),
            ],
            out_specs=pl.BlockSpec((tile, OUT_DIM), lambda i: (i, 0)),
        ),
        compiler_params=pltpu.CompilerParams(
            dimension_semantics=("parallel",),        # shards row blocks across v7x's 2 TCs
            vmem_limit_bytes=VMEM_LIMIT_BYTES,
        ),
    )(x, slab, b1s, w1s, w2s)

    # PyTorch returns (batch=rows, T=1, 2 * lstm_hidden_size2)
    return out2d[:n].reshape(n, 1, OUT_DIM)


# ----------------------------- deterministic parameter setup --------------------------
def positional_encoding(d_model, max_len=MAX_LEN):
    position = jnp.arange(max_len, dtype=jnp.float32)[:, None]
    div_term = jnp.exp(jnp.arange(0, d_model, 2, dtype=jnp.float32)
                       * (-math.log(10000.0) / d_model))
    pe = jnp.zeros((max_len, d_model), jnp.float32)
    pe = pe.at[:, 0::2].set(jnp.sin(position * div_term))
    if d_model % 2 == 0:
        pe = pe.at[:, 1::2].set(jnp.cos(position * div_term))
    else:
        pe = pe.at[:, 1::2].set(jnp.cos(position * div_term[:-1]))
    return pe


def init_params(key):
    """Raw module-like parameters (f32), pre-transposed to (in, out) layout.
    Includes Q/K projections and W_hh so the independent reference can validate that
    they provably do not affect the output (seq-len-1 attention, zero initial state)."""
    D, F, H1, H2 = INPUT_SIZE, DIM_FF, LSTM_HIDDEN1, LSTM_HIDDEN2
    keys = iter(jax.random.split(key, 256))

    def u(shape, fan_in):
        bound = 1.0 / math.sqrt(fan_in)
        return jax.random.uniform(next(keys), shape, dtype=jnp.float32,
                                  minval=-bound, maxval=bound)

    layers = []
    for _ in range(NUM_LAYERS):
        layers.append({
            "wq_t": u((D, D), D), "bq": u((1, D), D),      # query projection (unused in fused path)
            "wk_t": u((D, D), D), "bk": u((1, D), D),      # key projection   (unused in fused path)
            "wv_t": u((D, D), D), "bv": u((1, D), D),      # value projection
            "wo_t": u((D, D), D), "bo": u((1, D), D),      # attention out_proj
            "ln1_g": jnp.ones((1, D), jnp.float32), "ln1_b": jnp.zeros((1, D), jnp.float32),
            "w1_t": u((D, F), D), "b1": u((1, F), D),      # feed-forward linear1
            "w2_t": u((F, D), F), "b2": u((1, D), F),      # feed-forward linear2
            "ln2_g": jnp.ones((1, D), jnp.float32), "ln2_b": jnp.zeros((1, D), jnp.float32),
        })

    def lstm_dirs(in_dim, hidden):
        dirs = []
        for _ in range(BIDIR):
            dirs.append({
                "wih_t": u((in_dim, 4 * hidden), hidden),
                "whh_t": u((hidden, 4 * hidden), hidden),   # unused in fused path (h0 == 0)
                "bih": u((1, 4 * hidden), hidden),
                "bhh": u((1, 4 * hidden), hidden),
            })
        return dirs

    return {
        "layers": layers,
        "lstm1": [lstm_dirs(D, H1)],            # LAYER_DIM == 1
        "lstm2": [lstm_dirs(BIDIR * H1, H2)],
    }


def pack_params(pe0, params):
    """Fuse + pack parameters: one f32 small-param slab (8-aligned row offsets),
    f32 FF biases, bf16 FF weights."""
    D, H1, H2 = INPUT_SIZE, LSTM_HIDDEN1, LSTM_HIDDEN2
    slab = jnp.zeros((SLAB_ROWS, LANES), jnp.float32)
    slab = slab.at[ROW_PE, :D].set(pe0[0])

    for l, lp in enumerate(params["layers"]):
        base = ROW_TLAYER0 + l * ROWS_PER_TLAYER
        # exact f32 fusion of value projection + out_proj (seq-len-1 softmax == identity)
        w_attn = jnp.dot(lp["wv_t"], lp["wo_t"])
        b_attn = jnp.dot(lp["bv"], lp["wo_t"]) + lp["bo"]
        slab = slab.at[base:base + D, :D].set(w_attn)
        slab = slab.at[base + D + 0, :D].set(b_attn[0])
        slab = slab.at[base + D + 1, :D].set(lp["ln1_g"][0])
        slab = slab.at[base + D + 2, :D].set(lp["ln1_b"][0])
        slab = slab.at[base + D + 3, :D].set(lp["b2"][0])
        slab = slab.at[base + D + 4, :D].set(lp["ln2_g"][0])
        slab = slab.at[base + D + 5, :D].set(lp["ln2_b"][0])

    # LSTM1: concat the two directions' W_ih along out axis, pre-add b_ih + b_hh
    d0, d1 = params["lstm1"][0]
    wih1 = jnp.concatenate([d0["wih_t"], d1["wih_t"]], axis=1)                    # (32,256)
    bg1 = jnp.concatenate([d0["bih"] + d0["bhh"], d1["bih"] + d1["bhh"]], axis=1)
    slab = slab.at[ROW_LSTM1_W:ROW_LSTM1_W + D, :].set(wih1)
    slab = slab.at[ROW_LSTM1_B, :].set(bg1[0])

    # LSTM2
    d0, d1 = params["lstm2"][0]
    wih2 = jnp.concatenate([d0["wih_t"], d1["wih_t"]], axis=1)                    # (64,128)
    bg2 = jnp.concatenate([d0["bih"] + d0["bhh"], d1["bih"] + d1["bhh"]], axis=1)
    slab = slab.at[ROW_LSTM2_W:ROW_LSTM2_W + BIDIR * H1, :BIDIR * 4 * H2].set(wih2)
    slab = slab.at[ROW_LSTM2_B, :BIDIR * 4 * H2].set(bg2[0])

    b1s = jnp.concatenate([lp["b1"] for lp in params["layers"]], axis=0)           # (2,2048) f32
    w1s = jnp.stack([lp["w1_t"] for lp in params["layers"]]).astype(jnp.bfloat16)  # (2,32,2048)
    w2s = jnp.stack([lp["w2_t"] for lp in params["layers"]]).astype(jnp.bfloat16)  # (2,2048,32)
    return slab, b1s, w1s, w2s


# --------------- independent (unfused) PyTorch-semantics reference --------------------
def _reference_unfused(x, pe, params):
    """Full f32 reference without any of the kernel's algebraic fusions: real per-head
    Q/K/V attention over the length-1 transformer sequence, full LSTM cell with W_hh and
    forget gate on the zero initial state.  Validates the structural simplifications."""
    D, H1, H2 = INPUT_SIZE, LSTM_HIDDEN1, LSTM_HIDDEN2
    dh = D // NHEAD

    y = x + pe[0]                               # x.unsqueeze(0): S == 1 -> only pe row 0
    for lp in params["layers"]:
        q = y @ lp["wq_t"] + lp["bq"]
        k = y @ lp["wk_t"] + lp["bk"]
        v = y @ lp["wv_t"] + lp["bv"]
        heads = []
        for h in range(NHEAD):
            sl = slice(h * dh, (h + 1) * dh)
            # each batch row attends over S == 1 keys (itself)
            s = jnp.sum(q[:, sl] * k[:, sl], axis=-1, keepdims=True) / math.sqrt(dh)
            p = jax.nn.softmax(s, axis=-1)      # softmax over a single score == 1
            heads.append(p * v[:, sl])
        attn = jnp.concatenate(heads, axis=-1) @ lp["wo_t"] + lp["bo"]
        y = _layer_norm(y + attn, lp["ln1_g"], lp["ln1_b"])
        ff = jnp.maximum(y @ lp["w1_t"] + lp["b1"], 0.0) @ lp["w2_t"] + lp["b2"]
        y = _layer_norm(y + ff, lp["ln2_g"], lp["ln2_b"])

    def lstm_step(inp, dirs, hidden):
        outs = []
        for d in dirs:
            h0 = jnp.zeros((inp.shape[0], hidden), jnp.float32)
            c0 = jnp.zeros_like(h0)
            g = inp @ d["wih_t"] + d["bih"] + h0 @ d["whh_t"] + d["bhh"]
            i = jax.nn.sigmoid(g[:, 0 * hidden:1 * hidden])
            f = jax.nn.sigmoid(g[:, 1 * hidden:2 * hidden])
            gc = jnp.tanh(g[:, 2 * hidden:3 * hidden])
            o = jax.nn.sigmoid(g[:, 3 * hidden:4 * hidden])
            c = f * c0 + i * gc
            outs.append(o * jnp.tanh(c))
        return jnp.concatenate(outs, axis=-1)

    out1 = lstm_step(y, params["lstm1"][0], H1)          # dropout: eval-mode identity
    return lstm_step(out1, params["lstm2"][0], H2)


# --------------------------------------- main -----------------------------------------
if __name__ == "__main__":
    key = jax.random.PRNGKey(0)
    kx, kp, kb = jax.random.split(key, 3)

    pe = positional_encoding(INPUT_SIZE)
    params = init_params(kp)
    slab, b1s, w1s, w2s = pack_params(pe[:1], params)

    # --- single (seq=8, d_model=32) sequence, exactly the PyTorch module's forward ----
    x = jax.random.normal(kx, (SEQ_LEN, INPUT_SIZE), jnp.float32)
    out = jax.block_until_ready(transformer_lstm_encoder(x, slab, b1s, w1s, w2s))
    assert out.shape == (SEQ_LEN, 1, OUT_DIM), out.shape

    # same-math reference (identical packed/bf16 params) -> tight tolerance
    ref_fused = _forward_math(x, slab, b1s, w1s, w2s)
    err_fused = float(jnp.max(jnp.abs(out[:, 0, :] - ref_fused)))
    assert err_fused < 2e-3, err_fused

    # independent unfused f32 reference (validates attention/LSTM/dropout simplifications;
    # deviation is dominated by the bf16 feed-forward weights)
    ref_full = _reference_unfused(x, pe, params)
    err_full = float(jnp.max(jnp.abs(out[:, 0, :] - ref_full)))
    assert err_full < 2e-2, err_full

    # --- batched path: many independent rows exercises the multi-step "parallel" grid --
    xb = jax.random.normal(kb, (1040, INPUT_SIZE), jnp.float32)   # non-multiple of tile
    outb = jax.block_until_ready(transformer_lstm_encoder(xb, slab, b1s, w1s, w2s))
    assert outb.shape == (1040, 1, OUT_DIM), outb.shape
    refb = _forward_math(xb, slab, b1s, w1s, w2s)
    err_b = float(jnp.max(jnp.abs(outb[:, 0, :] - refb)))
    assert err_b < 2e-3, err_b

    print("KERNEL_OK")
</pallas_src>

<mosaic_0001>
module attributes {stable_mosaic.version = 11 : i64} {
  func.func @_kernel(%arg0: i32, %arg1: memref<8x32xf32, #tpu.memory_space<vmem>>, %arg2: memref<200x256xf32, #tpu.memory_space<vmem>>, %arg3: memref<2x2048xf32, #tpu.memory_space<vmem>>, %arg4: memref<2x32x2048xbf16, #tpu.memory_space<vmem>>, %arg5: memref<2x2048x32xbf16, #tpu.memory_space<vmem>>, %arg6: memref<8x32xf32, #tpu.memory_space<vmem>>) attributes {dimension_semantics = [#tpu.dimension_semantics<parallel>], iteration_bounds = array<i64: 1>, scalar_prefetch = 0 : i64, scratch_operands = 0 : i64, tpu.core_type = #tpu.core_type<tc>, window_params = [{transform_indices = @transform_0, window_bounds = array<i64: 8, 32>}, {pipeline_mode = #tpu.pipeline_mode<synchronous>, transform_indices = @transform_1, window_bounds = array<i64: 200, 256>}, {pipeline_mode = #tpu.pipeline_mode<synchronous>, transform_indices = @transform_2, window_bounds = array<i64: 2, 2048>}, {pipeline_mode = #tpu.pipeline_mode<synchronous>, transform_indices = @transform_3, window_bounds = array<i64: 2, 32, 2048>}, {pipeline_mode = #tpu.pipeline_mode<synchronous>, transform_indices = @transform_4, window_bounds = array<i64: 2, 2048, 32>}, {transform_indices = @transform_5, window_bounds = array<i64: 8, 32>}]} {
    %c0 = arith.constant 0 : index
    %c0_0 = arith.constant 0 : index
    %0 = vector.load %arg1[%c0, %c0_0] : memref<8x32xf32, #tpu.memory_space<vmem>>, vector<8x32xf32>
    %c0_1 = arith.constant 0 : index
    %c0_2 = arith.constant 0 : index
    %1 = vector.load %arg2[%c0_1, %c0_2] : memref<200x256xf32, #tpu.memory_space<vmem>>, vector<1x32xf32>
    %2 = vector.broadcast %1 : vector<1x32xf32> to vector<8x32xf32>
    %3 = arith.addf %0, %2 : vector<8x32xf32>
    %c8 = arith.constant 8 : index
    %c0_3 = arith.constant 0 : index
    %4 = vector.load %arg2[%c8, %c0_3] : memref<200x256xf32, #tpu.memory_space<vmem>>, vector<32x32xf32>
    %c40 = arith.constant 40 : index
    %c0_4 = arith.constant 0 : index
    %5 = vector.load %arg2[%c40, %c0_4] : memref<200x256xf32, #tpu.memory_space<vmem>>, vector<1x32xf32>
    %c41 = arith.constant 41 : index
    %c0_5 = arith.constant 0 : index
    %6 = vector.load %arg2[%c41, %c0_5] : memref<200x256xf32, #tpu.memory_space<vmem>>, vector<1x32xf32>
    %c42 = arith.constant 42 : index
    %c0_6 = arith.constant 0 : index
    %7 = vector.load %arg2[%c42, %c0_6] : memref<200x256xf32, #tpu.memory_space<vmem>>, vector<1x32xf32>
    %c43 = arith.constant 43 : index
    %c0_7 = arith.constant 0 : index
    %8 = vector.load %arg2[%c43, %c0_7] : memref<200x256xf32, #tpu.memory_space<vmem>>, vector<1x32xf32>
    %c44 = arith.constant 44 : index
    %c0_8 = arith.constant 0 : index
    %9 = vector.load %arg2[%c44, %c0_8] : memref<200x256xf32, #tpu.memory_space<vmem>>, vector<1x32xf32>
    %c45 = arith.constant 45 : index
    %c0_9 = arith.constant 0 : index
    %10 = vector.load %arg2[%c45, %c0_9] : memref<200x256xf32, #tpu.memory_space<vmem>>, vector<1x32xf32>
    %cst = arith.constant dense<0.000000e+00> : vector<8x32xf32>
    %11 = tpu.matmul %3, %4, %cst {dimension_numbers = #tpu.dot_dimension_numbers<[1], [0], [0], [1], [0, 0, 1, 1], [], []>} : vector<8x32xf32>, vector<32x32xf32>, vector<8x32xf32> -> vector<8x32xf32>
    %12 = vector.broadcast %5 : vector<1x32xf32> to vector<8x32xf32>
    %13 = arith.addf %11, %12 : vector<8x32xf32>
    %14 = arith.addf %3, %13 : vector<8x32xf32>
    %cst_10 = arith.constant dense<0.000000e+00> : vector<8xf32>
    %15 = vector.multi_reduction <add>, %14, %cst_10 [1] : vector<8x32xf32> to vector<8xf32>
    %16 = vector.shape_cast %15 : vector<8xf32> to vector<8x1xf32>
    %cst_11 = arith.constant 3.200000e+01 : f32
    %17 = vector.broadcast %cst_11 : f32 to vector<8x1xf32>
    %18 = arith.divf %16, %17 : vector<8x1xf32>
    %19 = vector.broadcast %18 : vector<8x1xf32> to vector<8x32xf32>
    %20 = arith.subf %14, %19 : vector<8x32xf32>
    %21 = arith.mulf %20, %20 : vector<8x32xf32>
    %cst_12 = arith.constant dense<0.000000e+00> : vector<8xf32>
    %22 = vector.multi_reduction <add>, %21, %cst_12 [1] : vector<8x32xf32> to vector<8xf32>
    %23 = vector.shape_cast %22 : vector<8xf32> to vector<8x1xf32>
    %cst_13 = arith.constant 3.200000e+01 : f32
    %24 = vector.broadcast %cst_13 : f32 to vector<8x1xf32>
    %25 = arith.divf %23, %24 : vector<8x1xf32>
    %26 = vector.broadcast %18 : vector<8x1xf32> to vector<8x32xf32>
    %27 = arith.subf %14, %26 : vector<8x32xf32>
    %cst_14 = arith.constant 9.99999974E-6 : f32
    %28 = vector.broadcast %cst_14 : f32 to vector<8x1xf32>
    %29 = arith.addf %25, %28 : vector<8x1xf32>
    %30 = math.rsqrt %29 : vector<8x1xf32>
    %31 = vector.broadcast %30 : vector<8x1xf32> to vector<8x32xf32>
    %32 = arith.mulf %27, %31 : vector<8x32xf32>
    %33 = vector.broadcast %6 : vector<1x32xf32> to vector<8x32xf32>
    %34 = arith.mulf %32, %33 : vector<8x32xf32>
    %35 = vector.broadcast %7 : vector<1x32xf32> to vector<8x32xf32>
    %36 = arith.addf %34, %35 : vector<8x32xf32>
    %37 = arith.truncf %36 : vector<8x32xf32> to vector<8x32xbf16>
    %c0_15 = arith.constant 0 : index
    %c0_16 = arith.constant 0 : index
    %c0_17 = arith.constant 0 : index
    %38 = vector.load %arg4[%c0_15, %c0_16, %c0_17] : memref<2x32x2048xbf16, #tpu.memory_space<vmem>>, vector<1x32x2048xbf16>
    %39 = vector.shape_cast %38 : vector<1x32x2048xbf16> to vector<32x2048xbf16>
    %cst_18 = arith.constant dense<0.000000e+00> : vector<8x2048xf32>
    %40 = tpu.matmul %37, %39, %cst_18 {dimension_numbers = #tpu.dot_dimension_numbers<[1], [0], [0], [1], [0, 0, 1, 1], [], []>} : vector<8x32xbf16>, vector<32x2048xbf16>, vector<8x2048xf32> -> vector<8x2048xf32>
    %c0_19 = arith.constant 0 : index
    %c0_20 = arith.constant 0 : index
    %41 = vector.load %arg3[%c0_19, %c0_20] : memref<2x2048xf32, #tpu.memory_space<vmem>>, vector<1x2048xf32>
    %42 = vector.broadcast %41 : vector<1x2048xf32> to vector<8x2048xf32>
    %43 = arith.addf %40, %42 : vector<8x2048xf32>
    %cst_21 = arith.constant 0.000000e+00 : f32
    %44 = vector.broadcast %cst_21 : f32 to vector<8x2048xf32>
    %45 = arith.maximumf %43, %44 : vector<8x2048xf32>
    %46 = arith.truncf %45 : vector<8x2048xf32> to vector<8x2048xbf16>
    %c0_22 = arith.constant 0 : index
    %c0_23 = arith.constant 0 : index
    %c0_24 = arith.constant 0 : index
    %47 = vector.load %arg5[%c0_22, %c0_23, %c0_24] : memref<2x2048x32xbf16, #tpu.memory_space<vmem>>, vector<1x2048x32xbf16>
    %48 = vector.shape_cast %47 : vector<1x2048x32xbf16> to vector<2048x32xbf16>
    %cst_25 = arith.constant dense<0.000000e+00> : vector<8x32xf32>
    %49 = tpu.matmul %46, %48, %cst_25 {dimension_numbers = #tpu.dot_dimension_numbers<[1], [0], [0], [1], [0, 0, 1, 1], [], []>} : vector<8x2048xbf16>, vector<2048x32xbf16>, vector<8x32xf32> -> vector<8x32xf32>
    %50 = vector.broadcast %8 : vector<1x32xf32> to vector<8x32xf32>
    %51 = arith.addf %49, %50 : vector<8x32xf32>
    %52 = arith.addf %36, %51 : vector<8x32xf32>
    %cst_26 = arith.constant dense<0.000000e+00> : vector<8xf32>
    %53 = vector.multi_reduction <add>, %52, %cst_26 [1] : vector<8x32xf32> to vector<8xf32>
    %54 = vector.shape_cast %53 : vector<8xf32> to vector<8x1xf32>
    %cst_27 = arith.constant 3.200000e+01 : f32
    %55 = vector.broadcast %cst_27 : f32 to vector<8x1xf32>
    %56 = arith.divf %54, %55 : vector<8x1xf32>
    %57 = vector.broadcast %56 : vector<8x1xf32> to vector<8x32xf32>
    %58 = arith.subf %52, %57 : vector<8x32xf32>
    %59 = arith.mulf %58, %58 : vector<8x32xf32>
    %cst_28 = arith.constant dense<0.000000e+00> : vector<8xf32>
    %60 = vector.multi_reduction <add>, %59, %cst_28 [1] : vector<8x32xf32> to vector<8xf32>
    %61 = vector.shape_cast %60 : vector<8xf32> to vector<8x1xf32>
    %cst_29 = arith.constant 3.200000e+01 : f32
    %62 = vector.broadcast %cst_29 : f32 to vector<8x1xf32>
    %63 = arith.divf %61, %62 : vector<8x1xf32>
    %64 = vector.broadcast %56 : vector<8x1xf32> to vector<8x32xf32>
    %65 = arith.subf %52, %64 : vector<8x32xf32>
    %cst_30 = arith.constant 9.99999974E-6 : f32
    %66 = vector.broadcast %cst_30 : f32 to vector<8x1xf32>
    %67 = arith.addf %63, %66 : vector<8x1xf32>
    %68 = math.rsqrt %67 : vector<8x1xf32>
    %69 = vector.broadcast %68 : vector<8x1xf32> to vector<8x32xf32>
    %70 = arith.mulf %65, %69 : vector<8x32xf32>
    %71 = vector.broadcast %9 : vector<1x32xf32> to vector<8x32xf32>
    %72 = arith.mulf %70, %71 : vector<8x32xf32>
    %73 = vector.broadcast %10 : vector<1x32xf32> to vector<8x32xf32>
    %74 = arith.addf %72, %73 : vector<8x32xf32>
    %c48 = arith.constant 48 : index
    %c0_31 = arith.constant 0 : index
    %75 = vector.load %arg2[%c48, %c0_31] : memref<200x256xf32, #tpu.memory_space<vmem>>, vector<32x32xf32>
    %c80 = arith.constant 80 : index
    %c0_32 = arith.constant 0 : index
    %76 = vector.load %arg2[%c80, %c0_32] : memref<200x256xf32, #tpu.memory_space<vmem>>, vector<1x32xf32>
    %c81 = arith.constant 81 : index
    %c0_33 = arith.constant 0 : index
    %77 = vector.load %arg2[%c81, %c0_33] : memref<200x256xf32, #tpu.memory_space<vmem>>, vector<1x32xf32>
    %c82 = arith.constant 82 : index
    %c0_34 = arith.constant 0 : index
    %78 = vector.load %arg2[%c82, %c0_34] : memref<200x256xf32, #tpu.memory_space<vmem>>, vector<1x32xf32>
    %c83 = arith.constant 83 : index
    %c0_35 = arith.constant 0 : index
    %79 = vector.load %arg2[%c83, %c0_35] : memref<200x256xf32, #tpu.memory_space<vmem>>, vector<1x32xf32>
    %c84 = arith.constant 84 : index
    %c0_36 = arith.constant 0 : index
    %80 = vector.load %arg2[%c84, %c0_36] : memref<200x256xf32, #tpu.memory_space<vmem>>, vector<1x32xf32>
    %c85 = arith.constant 85 : index
    %c0_37 = arith.constant 0 : index
    %81 = vector.load %arg2[%c85, %c0_37] : memref<200x256xf32, #tpu.memory_space<vmem>>, vector<1x32xf32>
    %cst_38 = arith.constant dense<0.000000e+00> : vector<8x32xf32>
    %82 = tpu.matmul %74, %75, %cst_38 {dimension_numbers = #tpu.dot_dimension_numbers<[1], [0], [0], [1], [0, 0, 1, 1], [], []>} : vector<8x32xf32>, vector<32x32xf32>, vector<8x32xf32> -> vector<8x32xf32>
    %83 = vector.broadcast %76 : vector<1x32xf32> to vector<8x32xf32>
    %84 = arith.addf %82, %83 : vector<8x32xf32>
    %85 = arith.addf %74, %84 : vector<8x32xf32>
    %cst_39 = arith.constant dense<0.000000e+00> : vector<8xf32>
    %86 = vector.multi_reduction <add>, %85, %cst_39 [1] : vector<8x32xf32> to vector<8xf32>
    %87 = vector.shape_cast %86 : vector<8xf32> to vector<8x1xf32>
    %cst_40 = arith.constant 3.200000e+01 : f32
    %88 = vector.broadcast %cst_40 : f32 to vector<8x1xf32>
    %89 = arith.divf %87, %88 : vector<8x1xf32>
    %90 = vector.broadcast %89 : vector<8x1xf32> to vector<8x32xf32>
    %91 = arith.subf %85, %90 : vector<8x32xf32>
    %92 = arith.mulf %91, %91 : vector<8x32xf32>
    %cst_41 = arith.constant dense<0.000000e+00> : vector<8xf32>
    %93 = vector.multi_reduction <add>, %92, %cst_41 [1] : vector<8x32xf32> to vector<8xf32>
    %94 = vector.shape_cast %93 : vector<8xf32> to vector<8x1xf32>
    %cst_42 = arith.constant 3.200000e+01 : f32
    %95 = vector.broadcast %cst_42 : f32 to vector<8x1xf32>
    %96 = arith.divf %94, %95 : vector<8x1xf32>
    %97 = vector.broadcast %89 : vector<8x1xf32> to vector<8x32xf32>
    %98 = arith.subf %85, %97 : vector<8x32xf32>
    %cst_43 = arith.constant 9.99999974E-6 : f32
    %99 = vector.broadcast %cst_43 : f32 to vector<8x1xf32>
    %100 = arith.addf %96, %99 : vector<8x1xf32>
    %101 = math.rsqrt %100 : vector<8x1xf32>
    %102 = vector.broadcast %101 : vector<8x1xf32> to vector<8x32xf32>
    %103 = arith.mulf %98, %102 : vector<8x32xf32>
    %104 = vector.broadcast %77 : vector<1x32xf32> to vector<8x32xf32>
    %105 = arith.mulf %103, %104 : vector<8x32xf32>
    %106 = vector.broadcast %78 : vector<1x32xf32> to vector<8x32xf32>
    %107 = arith.addf %105, %106 : vector<8x32xf32>
    %108 = arith.truncf %107 : vector<8x32xf32> to vector<8x32xbf16>
    %c1 = arith.constant 1 : index
    %c0_44 = arith.constant 0 : index
    %c0_45 = arith.constant 0 : index
    %109 = vector.load %arg4[%c1, %c0_44, %c0_45] : memref<2x32x2048xbf16, #tpu.memory_space<vmem>>, vector<1x32x2048xbf16>
    %110 = vector.shape_cast %109 : vector<1x32x2048xbf16> to vector<32x2048xbf16>
    %cst_46 = arith.constant dense<0.000000e+00> : vector<8x2048xf32>
    %111 = tpu.matmul %108, %110, %cst_46 {dimension_numbers = #tpu.dot_dimension_numbers<[1], [0], [0], [1], [0, 0, 1, 1], [], []>} : vector<8x32xbf16>, vector<32x2048xbf16>, vector<8x2048xf32> -> vector<8x2048xf32>
    %c1_47 = arith.constant 1 : index
    %c0_48 = arith.constant 0 : index
    %112 = vector.load %arg3[%c1_47, %c0_48] : memref<2x2048xf32, #tpu.memory_space<vmem>>, vector<1x2048xf32>
    %113 = vector.broadcast %112 : vector<1x2048xf32> to vector<8x2048xf32>
    %114 = arith.addf %111, %113 : vector<8x2048xf32>
    %cst_49 = arith.constant 0.000000e+00 : f32
    %115 = vector.broadcast %cst_49 : f32 to vector<8x2048xf32>
    %116 = arith.maximumf %114, %115 : vector<8x2048xf32>
    %117 = arith.truncf %116 : vector<8x2048xf32> to vector<8x2048xbf16>
    %c1_50 = arith.constant 1 : index
    %c0_51 = arith.constant 0 : index
    %c0_52 = arith.constant 0 : index
    %118 = vector.load %arg5[%c1_50, %c0_51, %c0_52] : memref<2x2048x32xbf16, #tpu.memory_space<vmem>>, vector<1x2048x32xbf16>
    %119 = vector.shape_cast %118 : vector<1x2048x32xbf16> to vector<2048x32xbf16>
    %cst_53 = arith.constant dense<0.000000e+00> : vector<8x32xf32>
    %120 = tpu.matmul %117, %119, %cst_53 {dimension_numbers = #tpu.dot_dimension_numbers<[1], [0], [0], [1], [0, 0, 1, 1], [], []>} : vector<8x2048xbf16>, vector<2048x32xbf16>, vector<8x32xf32> -> vector<8x32xf32>
    %121 = vector.broadcast %79 : vector<1x32xf32> to vector<8x32xf32>
    %122 = arith.addf %120, %121 : vector<8x32xf32>
    %123 = arith.addf %107, %122 : vector<8x32xf32>
    %cst_54 = arith.constant dense<0.000000e+00> : vector<8xf32>
    %124 = vector.multi_reduction <add>, %123, %cst_54 [1] : vector<8x32xf32> to vector<8xf32>
    %125 = vector.shape_cast %124 : vector<8xf32> to vector<8x1xf32>
    %cst_55 = arith.constant 3.200000e+01 : f32
    %126 = vector.broadcast %cst_55 : f32 to vector<8x1xf32>
    %127 = arith.divf %125, %126 : vector<8x1xf32>
    %128 = vector.broadcast %127 : vector<8x1xf32> to vector<8x32xf32>
    %129 = arith.subf %123, %128 : vector<8x32xf32>
    %130 = arith.mulf %129, %129 : vector<8x32xf32>
    %cst_56 = arith.constant dense<0.000000e+00> : vector<8xf32>
    %131 = vector.multi_reduction <add>, %130, %cst_56 [1] : vector<8x32xf32> to vector<8xf32>
    %132 = vector.shape_cast %131 : vector<8xf32> to vector<8x1xf32>
    %cst_57 = arith.constant 3.200000e+01 : f32
    %133 = vector.broadcast %cst_57 : f32 to vector<8x1xf32>
    %134 = arith.divf %132, %133 : vector<8x1xf32>
    %135 = vector.broadcast %127 : vector<8x1xf32> to vector<8x32xf32>
    %136 = arith.subf %123, %135 : vector<8x32xf32>
    %cst_58 = arith.constant 9.99999974E-6 : f32
    %137 = vector.broadcast %cst_58 : f32 to vector<8x1xf32>
    %138 = arith.addf %134, %137 : vector<8x1xf32>
    %139 = math.rsqrt %138 : vector<8x1xf32>
    %140 = vector.broadcast %139 : vector<8x1xf32> to vector<8x32xf32>
    %141 = arith.mulf %136, %140 : vector<8x32xf32>
    %142 = vector.broadcast %80 : vector<1x32xf32> to vector<8x32xf32>
    %143 = arith.mulf %141, %142 : vector<8x32xf32>
    %144 = vector.broadcast %81 : vector<1x32xf32> to vector<8x32xf32>
    %145 = arith.addf %143, %144 : vector<8x32xf32>
    %c88 = arith.constant 88 : index
    %c0_59 = arith.constant 0 : index
    %146 = vector.load %arg2[%c88, %c0_59] : memref<200x256xf32, #tpu.memory_space<vmem>>, vector<32x256xf32>
    %c120 = arith.constant 120 : index
    %c0_60 = arith.constant 0 : index
    %147 = vector.load %arg2[%c120, %c0_60] : memref<200x256xf32, #tpu.memory_space<vmem>>, vector<1x256xf32>
    %cst_61 = arith.constant dense<0.000000e+00> : vector<8x256xf32>
    %148 = tpu.matmul %145, %146, %cst_61 {dimension_numbers = #tpu.dot_dimension_numbers<[1], [0], [0], [1], [0, 0, 1, 1], [], []>} : vector<8x32xf32>, vector<32x256xf32>, vector<8x256xf32> -> vector<8x256xf32>
    %149 = vector.broadcast %147 : vector<1x256xf32> to vector<8x256xf32>
    %150 = arith.addf %148, %149 : vector<8x256xf32>
    %151 = vector.extract_strided_slice %150 {offsets = [0, 0], sizes = [8, 128], strides = [1, 1]} : vector<8x256xf32> to vector<8x128xf32>
    %152 = vector.extract_strided_slice %151 {offsets = [0, 0], sizes = [8, 32], strides = [1, 1]} : vector<8x128xf32> to vector<8x32xf32>
    %153 = arith.negf %152 : vector<8x32xf32>
    %154 = math.exp %153 : vector<8x32xf32>
    %cst_62 = arith.constant 1.000000e+00 : f32
    %155 = vector.broadcast %cst_62 : f32 to vector<8x32xf32>
    %156 = arith.addf %155, %154 : vector<8x32xf32>
    %157 = arith.divf %155, %156 : vector<8x32xf32>
    %158 = vector.extract_strided_slice %151 {offsets = [0, 64], sizes = [8, 32], strides = [1, 1]} : vector<8x128xf32> to vector<8x32xf32>
    %159 = math.tanh %158 : vector<8x32xf32>
    %160 = vector.extract_strided_slice %151 {offsets = [0, 96], sizes = [8, 32], strides = [1, 1]} : vector<8x128xf32> to vector<8x32xf32>
    %161 = arith.negf %160 : vector<8x32xf32>
    %162 = math.exp %161 : vector<8x32xf32>
    %cst_63 = arith.constant 1.000000e+00 : f32
    %163 = vector.broadcast %cst_63 : f32 to vector<8x32xf32>
    %164 = arith.addf %163, %162 : vector<8x32xf32>
    %165 = arith.divf %163, %164 : vector<8x32xf32>
    %166 = arith.mulf %157, %159 : vector<8x32xf32>
    %167 = math.tanh %166 : vector<8x32xf32>
    %168 = arith.mulf %165, %167 : vector<8x32xf32>
    %169 = vector.extract_strided_slice %150 {offsets = [0, 128], sizes = [8, 128], strides = [1, 1]} : vector<8x256xf32> to vector<8x128xf32>
    %170 = vector.extract_strided_slice %169 {offsets = [0, 0], sizes = [8, 32], strides = [1, 1]} : vector<8x128xf32> to vector<8x32xf32>
    %171 = arith.negf %170 : vector<8x32xf32>
    %172 = math.exp %171 : vector<8x32xf32>
    %cst_64 = arith.constant 1.000000e+00 : f32
    %173 = vector.broadcast %cst_64 : f32 to vector<8x32xf32>
    %174 = arith.addf %173, %172 : vector<8x32xf32>
    %175 = arith.divf %173, %174 : vector<8x32xf32>
    %176 = vector.extract_strided_slice %169 {offsets = [0, 64], sizes = [8, 32], strides = [1, 1]} : vector<8x128xf32> to vector<8x32xf32>
    %177 = math.tanh %176 : vector<8x32xf32>
    %178 = vector.extract_strided_slice %169 {offsets = [0, 96], sizes = [8, 32], strides = [1, 1]} : vector<8x128xf32> to vector<8x32xf32>
    %179 = arith.negf %178 : vector<8x32xf32>
    %180 = math.exp %179 : vector<8x32xf32>
    %cst_65 = arith.constant 1.000000e+00 : f32
    %181 = vector.broadcast %cst_65 : f32 to vector<8x32xf32>
    %182 = arith.addf %181, %180 : vector<8x32xf32>
    %183 = arith.divf %181, %182 : vector<8x32xf32>
    %184 = arith.mulf %175, %177 : vector<8x32xf32>
    %185 = math.tanh %184 : vector<8x32xf32>
    %186 = arith.mulf %183, %185 : vector<8x32xf32>
    %187 = tpu.concatenate %168, %186 in 1 : vector<8x32xf32>, vector<8x32xf32> -> vector<8x64xf32>
    %c128 = arith.constant 128 : index
    %c0_66 = arith.constant 0 : index
    %188 = vector.load %arg2[%c128, %c0_66] : memref<200x256xf32, #tpu.memory_space<vmem>>, vector<64x128xf32>
    %c192 = arith.constant 192 : index
    %c0_67 = arith.constant 0 : index
    %189 = vector.load %arg2[%c192, %c0_67] : memref<200x256xf32, #tpu.memory_space<vmem>>, vector<1x128xf32>
    %cst_68 = arith.constant dense<0.000000e+00> : vector<8x128xf32>
    %190 = tpu.matmul %187, %188, %cst_68 {dimension_numbers = #tpu.dot_dimension_numbers<[1], [0], [0], [1], [0, 0, 1, 1], [], []>} : vector<8x64xf32>, vector<64x128xf32>, vector<8x128xf32> -> vector<8x128xf32>
    %191 = vector.broadcast %189 : vector<1x128xf32> to vector<8x128xf32>
    %192 = arith.addf %190, %191 : vector<8x128xf32>
    %193 = vector.extract_strided_slice %192 {offsets = [0, 0], sizes = [8, 64], strides = [1, 1]} : vector<8x128xf32> to vector<8x64xf32>
    %194 = vector.extract_strided_slice %193 {offsets = [0, 0], sizes = [8, 16], strides = [1, 1]} : vector<8x64xf32> to vector<8x16xf32>
    %195 = arith.negf %194 : vector<8x16xf32>
    %196 = math.exp %195 : vector<8x16xf32>
    %cst_69 = arith.constant 1.000000e+00 : f32
    %197 = vector.broadcast %cst_69 : f32 to vector<8x16xf32>
    %198 = arith.addf %197, %196 : vector<8x16xf32>
    %199 = arith.divf %197, %198 : vector<8x16xf32>
    %200 = vector.extract_strided_slice %193 {offsets = [0, 32], sizes = [8, 16], strides = [1, 1]} : vector<8x64xf32> to vector<8x16xf32>
    %201 = math.tanh %200 : vector<8x16xf32>
    %202 = vector.extract_strided_slice %193 {offsets = [0, 48], sizes = [8, 16], strides = [1, 1]} : vector<8x64xf32> to vector<8x16xf32>
    %203 = arith.negf %202 : vector<8x16xf32>
    %204 = math.exp %203 : vector<8x16xf32>
    %cst_70 = arith.constant 1.000000e+00 : f32
    %205 = vector.broadcast %cst_70 : f32 to vector<8x16xf32>
    %206 = arith.addf %205, %204 : vector<8x16xf32>
    %207 = arith.divf %205, %206 : vector<8x16xf32>
    %208 = arith.mulf %199, %201 : vector<8x16xf32>
    %209 = math.tanh %208 : vector<8x16xf32>
    %210 = arith.mulf %207, %209 : vector<8x16xf32>
    %211 = vector.extract_strided_slice %192 {offsets = [0, 64], sizes = [8, 64], strides = [1, 1]} : vector<8x128xf32> to vector<8x64xf32>
    %212 = vector.extract_strided_slice %211 {offsets = [0, 0], sizes = [8, 16], strides = [1, 1]} : vector<8x64xf32> to vector<8x16xf32>
    %213 = arith.negf %212 : vector<8x16xf32>
    %214 = math.exp %213 : vector<8x16xf32>
    %cst_71 = arith.constant 1.000000e+00 : f32
    %215 = vector.broadcast %cst_71 : f32 to vector<8x16xf32>
    %216 = arith.addf %215, %214 : vector<8x16xf32>
    %217 = arith.divf %215, %216 : vector<8x16xf32>
    %218 = vector.extract_strided_slice %211 {offsets = [0, 32], sizes = [8, 16], strides = [1, 1]} : vector<8x64xf32> to vector<8x16xf32>
    %219 = math.tanh %218 : vector<8x16xf32>
    %220 = vector.extract_strided_slice %211 {offsets = [0, 48], sizes = [8, 16], strides = [1, 1]} : vector<8x64xf32> to vector<8x16xf32>
    %221 = arith.negf %220 : vector<8x16xf32>
    %222 = math.exp %221 : vector<8x16xf32>
    %cst_72 = arith.constant 1.000000e+00 : f32
    %223 = vector.broadcast %cst_72 : f32 to vector<8x16xf32>
    %224 = arith.addf %223, %222 : vector<8x16xf32>
    %225 = arith.divf %223, %224 : vector<8x16xf32>
    %226 = arith.mulf %217, %219 : vector<8x16xf32>
    %227 = math.tanh %226 : vector<8x16xf32>
    %228 = arith.mulf %225, %227 : vector<8x16xf32>
    %229 = tpu.concatenate %210, %228 in 1 : vector<8x16xf32>, vector<8x16xf32> -> vector<8x32xf32>
    %c0_73 = arith.constant 0 : index
    %c0_74 = arith.constant 0 : index
    %230 = vector.load %arg6[%c0_73, %c0_74] : memref<8x32xf32, #tpu.memory_space<vmem>>, vector<8x32xf32>
    tpu.vector_store %arg6[%c0_73, %c0_74], %229 {strides = array<i32>} : memref<8x32xf32, #tpu.memory_space<vmem>>, vector<8x32xf32>,
    return
  }
  func.func @transform_0(%arg0: i32) -> (i32, i32) {
    %c0_i32 = arith.constant 0 : i32
    %c0_i32_0 = arith.constant 0 : i32
    return %arg0, %c0_i32 : i32, i32
  }
  func.func @transform_1(%arg0: i32) -> (i32, i32) {
    %c0_i32 = arith.constant 0 : i32
    %c0_i32_0 = arith.constant 0 : i32
    %c0_i32_1 = arith.constant 0 : i32
    return %c0_i32, %c0_i32_0 : i32, i32
  }
  func.func @transform_2(%arg0: i32) -> (i32, i32) {
    %c0_i32 = arith.constant 0 : i32
    %c0_i32_0 = arith.constant 0 : i32
    %c0_i32_1 = arith.constant 0 : i32
    return %c0_i32, %c0_i32_0 : i32, i32
  }
  func.func @transform_3(%arg0: i32) -> (i32, i32, i32) {
    %c0_i32 = arith.constant 0 : i32
    %c0_i32_0 = arith.constant 0 : i32
    %c0_i32_1 = arith.constant 0 : i32
    %c0_i32_2 = arith.constant 0 : i32
    return %c0_i32, %c0_i32_0, %c0_i32_1 : i32, i32, i32
  }
  func.func @transform_4(%arg0: i32) -> (i32, i32, i32) {
    %c0_i32 = arith.constant 0 : i32
    %c0_i32_0 = arith.constant 0 : i32
    %c0_i32_1 = arith.constant 0 : i32
    %c0_i32_2 = arith.constant 0 : i32
    return %c0_i32, %c0_i32_0, %c0_i32_1 : i32, i32, i32
  }
  func.func @transform_5(%arg0: i32) -> (i32, i32) {
    %c0_i32 = arith.constant 0 : i32
    %c0_i32_0 = arith.constant 0 : i32
    return %arg0, %c0_i32 : i32, i32
  }
}

</mosaic_0001>

<bundles_post_ra>
// kernel: tpu_custom_call.1
= control target key start
LH: loop header
LB: loop body
LE: loop exit
PB: predicated region body
PF: predicated region fallthrough
CT: control target
= control target key end

     0   :  { %v5896_v3 = vmov 0.0|0.0   ;;  %vm5897_vm0 = vmmov 0   ;;  %v5898_v6 = vmov 0.0   ;;  %vm35_vm1 = vcmask 261120   ;;  %s7286_s0 = inlined_call_operand.vmem [shape: f32[8,32], index: 0, kind: input, shape index: {}]   ;;  %s7287_s1 = inlined_call_operand.vmem [shape: f32[200,256], index: 1, kind: input, shape index: {}]   ;;  %s7288_s2 = inlined_call_operand.vmem [shape: f32[2,2048], index: 2, kind: input, shape index: {}]   ;;  %s7289_s3 = inlined_call_operand.vmem [shape: bf16[2,32,2048], index: 3, kind: input, shape index: {}]   ;;  %s7290_s4 = inlined_call_operand.vmem [shape: bf16[2,2048,32], index: 4, kind: input, shape index: {}]   ;;  %s7291_s5 = inlined_call_operand.hbm [shape: f32[8,32], index: 5, kind: output, shape index: {}]  }
   0x1   :  { %v25_v0 = vld [vmem:[%s7287_s1 + $0x10] sm:$0xff]  ;;  %v26_v1 = vld [vmem:[%s7287_s1 + $0x20] sm:$0xff]  ;;  %5542 = vmatprep.subr.bf16.mxu0 %v5896_v3  ;;  %5509 = vmatprep.mubr.msk.f32.mxu0 %vm5897_vm0, %v5898_v6 }
   0x2   :  { %v27_v2 = vld [vmem:[%s7287_s1 + $0x30] sm:$0xff]  ;;  %v5543_v4 = vpack.c.bf16 %v26_v1, %v25_v0  ;;  %v28_v5 = vld [vmem:[%s7287_s1 + $0x40] sm:$0xff] }
   0x3   :  { %v23_v7 = vld [vmem:[%s7287_s1] ss:$0 sm:$0xff]  ;;  %v5546_v9 = vpack.c.bf16 %v28_v5, %v27_v2 }
   0x4   :  { %v22_v8 = vld [vmem:[%s7286_s0] sm:$0xff]  ;;  %5544 = vmatpush3.bf16.msra.mxu0 %v5543_v4 }
   0x5   :  { %5545 = vmatprep.subr.bf16.mxu0 %v5896_v3  ;;  %v24_v10 = vadd.f32 %v23_v7, %v22_v8 }
   0x8   :  { %5547 = vmatpush3.bf16.msra.mxu0 %v5546_v9 }
   0xb   :  { %5510 = vmatmul.mubr.msk.f32.vlgmr.msra.gmra.mrb[0].mxu0 %vm35_vm1, %v24_v10 }
   0xc   :  { %10 = vsyncpa [#allocation3], 0  ;;  %v29_v11 = vld [vmem:[%s7287_s1 + $0x50] ss:$0 sm:$0xff]  ;;  %v127_v22 = vld [vmem:[%s7289_s3] sm:$0xff]  ;;  %v5899_v43 = vmov 0  }
   0xd   :  { %v135_v23 = vld [vmem:[%s7289_s3 + $0x40] sm:$0xff]  ;;  %v128_v24 = vld [vmem:[%s7289_s3 + $0x8] sm:$0xff]  ;;  %v129_v38 = vld [vmem:[%s7289_s3 + $0x10] sm:$0xff]  ;;  %439 = vmatprep.mubr.bf16.mxu1 %v5899_v43  ;;  %480 = vmatprep.mubr.bf16.mxu0 %v5899_v43  ;;  %s5900_s7 = smov 64   ;;  %s5901_s19 = smov 96   ;;  %vm4379_vm2 = vcmask 523264  }
   0xe   :  { %v4498_v25 = vcombine.high %v127_v22, %v135_v23  ;;  %v136_v26 = vld [vmem:[%s7289_s3 + $0x48] sm:$0xff]  ;;  %v4497_v29 = vcombine.low %v127_v22, %v135_v23  ;;  %v143_v30 = vld [vmem:[%s7289_s3 + $0x80] sm:$0xff]  ;;  %v137_v39 = vld [vmem:[%s7289_s3 + $0x50] sm:$0xff]  ;;  %s5902_s24 = smov 32   ;;  %s5903_s27 = smov 48   ;;  %vm4478_vm3 = vcmask 130048  }
   0xf   :  { %v4499_v27 = vcombine.low %v128_v24, %v136_v26  ;;  %v4500_v28 = vcombine.high %v128_v24, %v136_v26  ;;  %v151_v31 = vld [vmem:[%s7289_s3 + $0xc0] sm:$0xff]  ;;  %v144_v32 = vld [vmem:[%s7289_s3 + $0x88] sm:$0xff]  ;;  %v130_v40 = vld [vmem:[%s7289_s3 + $0x18] sm:$0xff]  ;;  %v4502_v41 = vcombine.high %v129_v38, %v137_v39  ;;  %v4501_v44 = vcombine.low %v129_v38, %v137_v39 }
  0x10   :  { %407 = vmatprep.subr.bf16.mxu1 %v4498_v25  ;;  %v4514_v33 = vcombine.high %v143_v30, %v151_v31  ;;  %v152_v34 = vld [vmem:[%s7289_s3 + $0xc8] sm:$0xff]  ;;  %v4513_v37 = vcombine.low %v143_v30, %v151_v31  ;;  %v138_v42 = vld [vmem:[%s7289_s3 + $0x58] sm:$0xff]  ;;  %v30_v51 = vld [vmem:[%s7287_s1 + $0x51] ss:$0 sm:$0xff] }
  0x11   :  { %448 = vmatprep.subr.bf16.mxu0 %v4500_v28  ;;  %408 = vmatpush1.bf16.msra.mxu1 %v4497_v29  ;;  %v4515_v35 = vcombine.low %v144_v32, %v152_v34  ;;  %v4516_v36 = vcombine.high %v144_v32, %v152_v34  ;;  %v4503_v45 = vcombine.low %v130_v40, %v138_v42  ;;  %v31_v53 = vld [vmem:[%s7287_s1 + $0x52] ss:$0 sm:$0xff]  ;;  %v146_v57 = vld [vmem:[%s7289_s3 + $0x98] sm:$0xff]  ;;  %v131_v63 = vld [vmem:[%s7289_s3 + $0x20] sm:$0xff] }
  0x12   :  { %449 = vmatpush1.bf16.msra.mxu0 %v4499_v27  ;;  %409 = vmatprep.subr.bf16.mxu1 %v4514_v33  ;;  %v4504_v46 = vcombine.high %v130_v40, %v138_v42  ;;  %v145_v55 = vld [vmem:[%s7289_s3 + $0x90] sm:$0xff]  ;;  %v154_v58 = vld [vmem:[%s7289_s3 + $0xd8] sm:$0xff]  ;;  %v139_v0 = vld [vmem:[%s7289_s3 + $0x60] sm:$0xff] }
  0x13   :  { %450 = vmatprep.subr.bf16.mxu0 %v4516_v36  ;;  %v153_v56 = vld [vmem:[%s7289_s3 + $0xd0] sm:$0xff]  ;;  %v4520_v62 = vcombine.high %v146_v57, %v154_v58  ;;  %v132_v1 = vld [vmem:[%s7289_s3 + $0x28] sm:$0xff]  ;;  %v4519_v5 = vcombine.low %v146_v57, %v154_v58  ;;  %v4506_v7 = vcombine.high %v131_v63, %v139_v0  ;;  %v147_v9 = vld [vmem:[%s7289_s3 + $0xa0] sm:$0xff] }
  0x14   :  { %v4518_v61 = vcombine.high %v145_v55, %v153_v56  ;;  %v140_v2 = vld [vmem:[%s7289_s3 + $0x68] sm:$0xff]  ;;  %v4517_v4 = vcombine.low %v145_v55, %v153_v56  ;;  %v149_v25 = vld [vmem:[%s7289_s3 + $0xb0] sm:$0xff]  ;;  %v150_v27 = vld [vmem:[%s7289_s3 + $0xb8] sm:$0xff] }
  0x15   :  { %410 = vmatpush1.bf16.msra.mxu1 %v4513_v37  ;;  %v4508_v8 = vcombine.high %v132_v1, %v140_v2  ;;  %v157_v26 = vld [vmem:[%s7289_s3 + $0xf0] sm:$0xff]  ;;  %v158_v28 = vld [vmem:[%s7289_s3 + $0xf8] sm:$0xff]  ;;  %v5585_v36 = vld [vmem:[%s7290_s4 + $0xc0] sm:$0xff]  }
  0x16   :  { %451 = vmatpush1.bf16.msra.mxu0 %v4515_v35  ;;  %489 = vmatprep.subr.bf16.mxu1 %v4502_v41  ;;  %v4526_v31 = vcombine.high %v149_v25, %v157_v26  ;;  %v4528_v32 = vcombine.high %v150_v27, %v158_v28  ;;  %v4525_v33 = vcombine.low %v149_v25, %v157_v26  ;;  %v5584_v35 = vld [vmem:[%s7290_s4 + $0x40] sm:$0xff]   ;;  %v5588_v39 = vld [vmem:[%s7290_s4 + $0x48] sm:$0xff]  }
  0x17   :  { %530 = vmatprep.subr.bf16.mxu0 %v4504_v46  ;;  %v4527_v34 = vcombine.low %v150_v27, %v158_v28  ;;  %v5586_v37 = vld [vmem:[%s7290_s4] sm:$0xff]   ;;  %v5589_v40 = vld [vmem:[%s7290_s4 + $0xc8] sm:$0xff]   ;;  %v5594_v46 = vld [vmem:[%s7290_s4 + $0x10] sm:$0xff]  }
  0x18   :  { %v5587_v38 = vld [vmem:[%s7290_s4 + $0x80] sm:$0xff]   ;;  %v5590_v41 = vld [vmem:[%s7290_s4 + $0x8] sm:$0xff]  }
  0x19   :  { %v5591_v42 = vld [vmem:[%s7290_s4 + $0x88] sm:$0xff]   ;;  %v5603_v55 = vld [vmem:[%s7290_s4 + $0xa0] sm:$0xff]  }
  0x1a   :  { %v5604_v56 = vld [vmem:[%s7290_s4 + $0x68] sm:$0xff]  }
  0x1b   :  { %v5605_v57 = vld [vmem:[%s7290_s4 + $0xe8] sm:$0xff]  }
  0x1c   :  { %v5606_v58 = vld [vmem:[%s7290_s4 + $0x28] sm:$0xff]  }
  0xde   :  { %v105_v12 = vpop.f32.mrb[0].mxu0 }
  0xdf   :  { %v106_v13 = vadd.f32 %v105_v12, %v29_v11  ;;  %v5511_v14 = vpop.f32.mrb[1].mxu0  ;;  %v148_v11 = vld [vmem:[%s7289_s3 + $0xa8] sm:$0xff] }
  0xe0   :  { %v156_v12 = vld [vmem:[%s7289_s3 + $0xe8] sm:$0xff]  ;;  %v4507_v14 = vcombine.low %v132_v1, %v140_v2  ;;  %v5612_v1 = vld [vmem:[%s7290_s4 + $0x78] sm:$0xff]  }
  0xe1   :  { %v109_v15 = vadd.f32 %v106_v13, %v24_v10  ;;  %v155_v10 = vld [vmem:[%s7289_s3 + $0xe0] sm:$0xff]  ;;  %v4505_v13 = vcombine.low %v131_v63, %v139_v0  ;;  %v4523_v22 = vcombine.low %v148_v11, %v156_v12  ;;  %v5610_v63 = vld [vmem:[%s7290_s4 + $0x30] sm:$0xff]   ;;  %v5613_v2 = vld [vmem:[%s7290_s4 + $0xf8] sm:$0xff]  }
  0xe2   :  { %v5611_v0 = vld [vmem:[%s7290_s4 + $0xb0] sm:$0xff]  }
  0xe3   :  { %v110_v16 = vsel %vm35_vm1, %v109_v15, 0.0 }
  0xe4   :  { %111 = vadd.xlane.f32.xlu0 %v110_v16  ;;  %v4524_v16 = vcombine.high %v148_v11, %v156_v12 }
 0x171   :  { %v112_v17 = vpop.xlane.xlu0 %111 }
 0x172   :  { %v114_v18 = vmul.f32 0.03125, %v112_v17  ;;  %v133_v17 = vld [vmem:[%s7289_s3 + $0x30] sm:$0xff] }
 0x174   :  { %v115_v19 = vsub.f32 %v109_v15, %v114_v18  ;;  %v4522_v15 = vcombine.high %v147_v9, %v155_v10  ;;  %v141_v18 = vld [vmem:[%s7289_s3 + $0x70] sm:$0xff] }
 0x175   :  { %v4510_v23 = vcombine.high %v133_v17, %v141_v18  ;;  %v4509_v29 = vcombine.low %v133_v17, %v141_v18 }
 0x176   :  { %v116_v20 = vmul.f32 %v115_v19, %v115_v19 }
 0x178   :  { %v117_v21 = vsel %vm35_vm1, %v116_v20, 0.0  ;;  %v142_v20 = vld [vmem:[%s7289_s3 + $0x78] sm:$0xff] }
 0x179   :  { %118 = vadd.xlane.f32.xlu0 %v117_v21  ;;  %v4521_v21 = vcombine.low %v147_v9, %v155_v10  ;;  %v164_v9 = vlaneseq }
 0x17b   :  { %v6198_v10 = vshrl.u32 %v164_v9, 7  ;;  %v5629_v9 = vld [vmem:[%s7290_s4 + $0x1d8] sm:$0xff]  }
 0x17d   :  { %v6201_v11 = vsub.s32 0, %v6198_v10  ;;  %v6204_v12 = vsub.s32 2, %v6198_v10 }
 0x206   :  { %v119_v47 = vpop.xlane.xlu0 %118 }
 0x207   :  { %v120_v48 = vmul.f32 0.03125, %v119_v47  ;;  %v5595_v47 = vld [vmem:[%s7290_s4 + $0x90] sm:$0xff]  }
 0x209   :  { %v121_v49 = vadd.f32 1e-05, %v120_v48  ;;  %v5596_v48 = vld [vmem:[%s7290_s4 + $0x58] sm:$0xff]  }
 0x20b   :  { %5840 = vrsqrt.f32 %v121_v49  ;;  %v5597_v49 = vld [vmem:[%s7290_s4 + $0xd8] sm:$0xff]  }
 0x215   :  { %v5841_v50 = vpop.eup %5840 }
 0x216   :  { %v123_v52 = vmul.f32 %v5841_v50, %v115_v19  ;;  %v134_v19 = vld [vmem:[%s7289_s3 + $0x38] sm:$0xff] }
 0x217   :  { %v4512_v24 = vcombine.high %v134_v19, %v142_v20  ;;  %v4511_v30 = vcombine.low %v134_v19, %v142_v20  ;;  %v5598_v50 = vld [vmem:[%s7290_s4 + $0x18] sm:$0xff]  }
 0x218   :  { %v124_v54 = vmul.f32 %v123_v52, %v30_v51  ;;  %v5599_v51 = vld [vmem:[%s7290_s4 + $0x98] sm:$0xff]   ;;  %v5600_v52 = vld [vmem:[%s7290_s4 + $0x60] sm:$0xff]  }
 0x21a   :  { %v6020_v59 = vadd.f32 %v124_v54, %v31_v53  ;;  %v5601_v53 = vld [vmem:[%s7290_s4 + $0xe0] sm:$0xff]  }
 0x21b   :  { %v5602_v54 = vld [vmem:[%s7290_s4 + $0x20] sm:$0xff]  }
 0x21c   :  { %v6024_v60 = vpack.c.bf16 %v6020_v59, %v6020_v59 }
 0x21e   :  { %4529 = vmatmul.mubr.msk.bf16.vlgmr.msra.gmra.mrb[0].mxu1 %vm35_vm1, %v6024_v60  ;;  %4530 = vmatmul.mubr.msk.bf16.vlgmr.msra.gmra.mrb[4].mxu0 %vm35_vm1, %v6024_v60 }
 0x21f   :  { %490 = vmatpush1.bf16.msra.mxu1 %v4501_v44  ;;  %531 = vmatpush1.bf16.msra.mxu0 %v4503_v45  ;;  %v5592_v44 = vld [vmem:[%s7290_s4 + $0x50] sm:$0xff]  }
 0x220   :  { %491 = vmatprep.subr.bf16.mxu1 %v4518_v61  ;;  %532 = vmatprep.subr.bf16.mxu0 %v4520_v62  ;;  %v5593_v45 = vld [vmem:[%s7290_s4 + $0xd0] sm:$0xff]  }
 0x221   :  { %521 = vmatprep.mubr.bf16.mxu1 %v5899_v43  ;;  %562 = vmatprep.mubr.bf16.mxu0 %v5899_v43  ;;  %v5608_v61 = vld [vmem:[%s7290_s4 + $0x70] sm:$0xff]  }
 0x222   :  { %v5609_v62 = vld [vmem:[%s7290_s4 + $0xf0] sm:$0xff]  }
 0x223   :  { %492 = vmatpush1.bf16.msra.mxu1 %v4517_v4  ;;  %533 = vmatpush1.bf16.msra.mxu0 %v4519_v5  ;;  %v5614_v4 = vld [vmem:[%s7290_s4 + $0x38] sm:$0xff]  }
 0x224   :  { %571 = vmatprep.subr.bf16.mxu1 %v4506_v7  ;;  %612 = vmatprep.subr.bf16.mxu0 %v4508_v8  ;;  %v5615_v5 = vld [vmem:[%s7290_s4 + $0xb8] sm:$0xff]   ;;  %v5616_v7 = vld [vmem:[%s7290_s4 + $0x140] sm:$0xff]  }
 0x225   :  { %v5617_v8 = vld [vmem:[%s7290_s4 + $0x1c0] sm:$0xff]  }
 0x226   :  { %4531 = vmatmul.mubr.msk.bf16.vlgmr.msra.gmra.mrb[4].mxu1 %vm35_vm1, %v6024_v60  ;;  %4532 = vmatmul.mubr.msk.bf16.vlgmr.msra.gmra.mrb[8].mxu0 %vm35_vm1, %v6024_v60 }
 0x227   :  { %572 = vmatpush1.bf16.msra.mxu1 %v4505_v13  ;;  %613 = vmatpush1.bf16.msra.mxu0 %v4507_v14  ;;  %v6209_v13 = vld [vmem:[%s7288_s2] ss:$2 sm:$0xff]  ;;  %v6212_v14 = vsub.s32 1, %v6198_v10 }
 0x228   :  { %573 = vmatprep.subr.bf16.mxu1 %v4522_v15  ;;  %614 = vmatprep.subr.bf16.mxu0 %v4524_v16  ;;  %v6215_v15 = vsub.s32 3, %v6198_v10  ;;  %v167_v16 = vrot.slane %v6209_v13, %v6201_v11  ;;  %v175_v17 = vrot.slane %v6209_v13, %v6204_v12 }
 0x229   :  { %603 = vmatprep.mubr.bf16.mxu1 %v5899_v43  ;;  %644 = vmatprep.mubr.bf16.mxu0 %v5899_v43  ;;  %v171_v18 = vrot.slane %v6209_v13, %v6212_v14 }
 0x22a   :  { %v179_v19 = vrot.slane %v6209_v13, %v6215_v15 }
 0x22b   :  { %574 = vmatpush1.bf16.msra.mxu1 %v4521_v21  ;;  %615 = vmatpush1.bf16.msra.mxu0 %v4523_v22 }
 0x22c   :  { %653 = vmatprep.subr.bf16.mxu1 %v4510_v23  ;;  %694 = vmatprep.subr.bf16.mxu0 %v4512_v24 }
 0x22e   :  { %4533 = vmatmul.mubr.msk.bf16.vlgmr.msra.gmra.mrb[8].mxu1 %vm35_vm1, %v6024_v60  ;;  %4534 = vmatmul.mubr.msk.bf16.vlgmr.msra.gmra.mrb[12].mxu0 %vm35_vm1, %v6024_v60 }
 0x22f   :  { %654 = vmatpush1.bf16.msra.mxu1 %v4509_v29  ;;  %695 = vmatpush1.bf16.msra.mxu0 %v4511_v30  ;;  %v6226_v30 = vsub.s32 5, %v6198_v10 }
 0x230   :  { %655 = vmatprep.subr.bf16.mxu1 %v4526_v31  ;;  %696 = vmatprep.subr.bf16.mxu0 %v4528_v32  ;;  %v6229_v31 = vsub.s32 7, %v6198_v10 }
 0x231   :  { %685 = vmatprep.mubr.bf16.mxu1 %v5899_v43  ;;  %726 = vmatprep.mubr.bf16.mxu0 %v5899_v43 }
 0x233   :  { %656 = vmatpush1.bf16.msra.mxu1 %v4525_v33  ;;  %697 = vmatpush1.bf16.msra.mxu0 %v4527_v34 }
 0x234   :  { %5135 = vmatprep.subr.bf16.mxu1 %v5584_v35  ;;  %5157 = vmatprep.subr.bf16.mxu0 %v5585_v36 }
 0x236   :  { %4535 = vmatmul.mubr.msk.bf16.vlgmr.msra.gmra.mrb[12].mxu1 %vm35_vm1, %v6024_v60  ;;  %4536 = vmatmul.mubr.msk.bf16.vlgmr.msra.gmra.mrb[16].mxu0 %vm35_vm1, %v6024_v60  ;;  %v5607_v60 = vld [vmem:[%s7290_s4 + $0xa8] sm:$0xff]  }
 0x237   :  { %5136 = vmatpush3.bf16.msra.mxu1 %v5586_v37  ;;  %5158 = vmatpush3.bf16.msra.mxu0 %v5587_v38 }
 0x238   :  { %5137 = vmatprep.subr.bf16.mxu1 %v5588_v39  ;;  %5159 = vmatprep.subr.bf16.mxu0 %v5589_v40  ;;  %v187_v40 = vrot.slane %v6209_v13, %v6226_v30 }
 0x23b   :  { %5138 = vmatpush3.bf16.msra.mxu1 %v5590_v41  ;;  %5160 = vmatpush3.bf16.msra.mxu0 %v5591_v42  ;;  %v195_v41 = vrot.slane %v6209_v13, %v6229_v31  ;;  %v5618_v42 = vld [vmem:[%s7290_s4 + $0x100] sm:$0xff]  }
 0x23c   :  { %5139 = vmatprep.subr.bf16.mxu1 %v5592_v44  ;;  %5161 = vmatprep.subr.bf16.mxu0 %v5593_v45  ;;  %v5619_v44 = vld [vmem:[%s7290_s4 + $0x180] sm:$0xff]  }
 0x23f   :  { %5140 = vmatpush3.bf16.msra.mxu1 %v5594_v46  ;;  %5162 = vmatpush3.bf16.msra.mxu0 %v5595_v47  ;;  %v5620_v47 = vld [vmem:[%s7290_s4 + $0x148] sm:$0xff]  }
 0x240   :  { %5141 = vmatprep.subr.bf16.mxu1 %v5596_v48  ;;  %5163 = vmatprep.subr.bf16.mxu0 %v5597_v49  ;;  %v5621_v48 = vld [vmem:[%s7290_s4 + $0x1c8] sm:$0xff]  }
 0x243   :  { %5142 = vmatpush3.bf16.msra.mxu1 %v5598_v50  ;;  %5164 = vmatpush3.bf16.msra.mxu0 %v5599_v51 }
 0x244   :  { %5143 = vmatprep.subr.bf16.mxu1 %v5600_v52  ;;  %5165 = vmatprep.subr.bf16.mxu0 %v5601_v53 }
 0x247   :  { %5144 = vmatpush3.bf16.msra.mxu1 %v5602_v54  ;;  %5166 = vmatpush3.bf16.msra.mxu0 %v5603_v55 }
 0x248   :  { %5145 = vmatprep.subr.bf16.mxu1 %v5604_v56  ;;  %5167 = vmatprep.subr.bf16.mxu0 %v5605_v57  ;;  %v5622_v57 = vld [vmem:[%s7290_s4 + $0x108] sm:$0xff]  }
 0x24b   :  { %5146 = vmatpush3.bf16.msra.mxu1 %v5606_v58  ;;  %5168 = vmatpush3.bf16.msra.mxu0 %v5607_v60  ;;  %v5623_v58 = vld [vmem:[%s7290_s4 + $0x188] sm:$0xff]  }
 0x24c   :  { %5147 = vmatprep.subr.bf16.mxu1 %v5608_v61  ;;  %5169 = vmatprep.subr.bf16.mxu0 %v5609_v62  ;;  %v5624_v62 = vld [vmem:[%s7290_s4 + $0x150] sm:$0xff]  }
 0x24f   :  { %5148 = vmatpush3.bf16.msra.mxu1 %v5610_v63  ;;  %5170 = vmatpush3.bf16.msra.mxu0 %v5611_v0  ;;  %v5625_v63 = vld [vmem:[%s7290_s4 + $0x1d0] sm:$0xff]  }
 0x250   :  { %5149 = vmatprep.subr.bf16.mxu1 %v5612_v1  ;;  %5171 = vmatprep.subr.bf16.mxu0 %v5613_v2 }
 0x253   :  { %5150 = vmatpush3.bf16.msra.mxu1 %v5614_v4  ;;  %5172 = vmatpush3.bf16.msra.mxu0 %v5615_v5  ;;  %v5626_v5 = vld [vmem:[%s7290_s4 + $0x110] sm:$0xff]  }
 0x254   :  { %5179 = vmatprep.subr.bf16.mxu1 %v5616_v7  ;;  %5201 = vmatprep.subr.bf16.mxu0 %v5617_v8  ;;  %v5627_v7 = vld [vmem:[%s7290_s4 + $0x190] sm:$0xff]   ;;  %v5628_v8 = vld [vmem:[%s7290_s4 + $0x158] sm:$0xff]  }
 0x2f1   :  { %v441_v20 = vpop.f32.mrb[0].mxu1  ;;  %v482_v21 = vpop.f32.mrb[4].mxu0 }
 0x2f2   :  { %v442_v22 = vadd.f32 %v441_v20, %v167_v16  ;;  %v483_v23 = vadd.f32 %v482_v21, %v175_v17  ;;  %v443_v24 = vpop.f32.mrb[1].mxu1  ;;  %v484_v25 = vpop.f32.mrb[5].mxu0 }
 0x2f3   :  { %v444_v26 = vadd.f32 %v443_v24, %v171_v18  ;;  %v485_v27 = vadd.f32 %v484_v25, %v179_v19  ;;  %v445_v28 = vpop.f32.mrb[2].mxu1  ;;  %v486_v29 = vpop.f32.mrb[6].mxu0  ;;  %v6286_v24 = vsub.s32 6, %v6198_v10 }
 0x2f4   :  { %v735_v32 = vmax.f32 %v442_v22, 0.0  ;;  %v737_v33 = vmax.f32 %v483_v23, 0.0  ;;  %v446_v34 = vpop.f32.mrb[3].mxu1  ;;  %v487_v35 = vpop.f32.mrb[7].mxu0  ;;  %v5630_v22 = vld [vmem:[%s7290_s4 + $0x118] sm:$0xff]   ;;  %v5633_v28 = vld [vmem:[%s7290_s4 + $0x1e0] sm:$0xff]  }
 0x2f5   :  { %v736_v36 = vmax.f32 %v444_v26, 0.0  ;;  %v738_v37 = vmax.f32 %v485_v27, 0.0  ;;  %v5631_v23 = vld [vmem:[%s7290_s4 + $0x198] sm:$0xff]   ;;  %v5632_v27 = vld [vmem:[%s7290_s4 + $0x160] sm:$0xff]   ;;  %v6308_v35 = vsub.s32 4, %v6198_v10 }
 0x2f6   :  { %v751_v45 = vpack.c.bf16 %v735_v32, %v735_v32  ;;  %v753_v46 = vpack.c.bf16 %v737_v33, %v737_v33  ;;  %v6297_v29 = vld [vmem:[%s7288_s2 + $0x10] ss:$2 sm:$0xff]  ;;  %v5634_v33 = vld [vmem:[%s7290_s4 + $0x120] sm:$0xff]  }
 0x2f7   :  { %v752_v38 = vpack.c.bf16 %v736_v36, %v736_v36  ;;  %v754_v39 = vpack.c.bf16 %v738_v37, %v738_v37  ;;  %v223_v32 = vrot.slane %v6297_v29, %v6286_v24  ;;  %v5635_v34 = vld [vmem:[%s7290_s4 + $0x1a0] sm:$0xff]   ;;  %v5636_v36 = vld [vmem:[%s7290_s4 + $0x168] sm:$0xff]  }
 0x2f8   :  { %v5637_v37 = vld [vmem:[%s7290_s4 + $0x1e8] sm:$0xff]  }
 0x2f9   :  { %v6247_v49 = vpop.f32.mrb[4].mxu1  ;;  %v6249_v50 = vpop.f32.mrb[8].mxu0  ;;  %1823 = vmatprep.mubr.bf16.mxu1 %v752_v38  ;;  %1863 = vmatprep.mubr.bf16.mxu0 %v754_v39 }
 0x2fa   :  { %v525_v51 = vpop.f32.mrb[5].mxu1  ;;  %v566_v52 = vpop.f32.mrb[9].mxu0  ;;  %1824 = vmatmul.mubr.bf16.vlgmr.msra.gmra.mrb[16].mxu1 %v751_v45  ;;  %1864 = vmatmul.mubr.bf16.vlgmr.msra.gmra.mrb[20].mxu0 %v753_v46  ;;  %v5638_v45 = vld [vmem:[%s7290_s4 + $0x128] sm:$0xff]  }
 0x2fb   :  { %v526_v53 = vadd.f32 %v525_v51, %v187_v40  ;;  %v567_v54 = vadd.f32 %v566_v52, %v195_v41  ;;  %5180 = vmatpush3.bf16.msra.mxu1 %v5618_v42  ;;  %5202 = vmatpush3.bf16.msra.mxu0 %v5619_v44  ;;  %v527_v55 = vpop.f32.mrb[6].mxu1  ;;  %v568_v56 = vpop.f32.mrb[10].mxu0  ;;  %v5639_v46 = vld [vmem:[%s7290_s4 + $0x1a8] sm:$0xff]  }
 0x2fc   :  { %v528_v60 = vpop.f32.mrb[7].mxu1  ;;  %v569_v61 = vpop.f32.mrb[11].mxu0  ;;  %5181 = vmatprep.subr.bf16.mxu1 %v5620_v47  ;;  %5203 = vmatprep.subr.bf16.mxu0 %v5621_v48  ;;  %v183_v47 = vrot.slane %v6209_v13, %v6308_v35  ;;  %v191_v48 = vrot.slane %v6209_v13, %v6286_v24  ;;  %v203_v55 = vrot.slane %v6297_v29, %v6212_v14  ;;  %v5642_v13 = vld [vmem:[%s7290_s4 + $0x130] sm:$0xff]  }
 0x2fd   :  { %v740_v0 = vmax.f32 %v526_v53, 0.0  ;;  %v742_v1 = vmax.f32 %v567_v54, 0.0  ;;  %v5640_v53 = vld [vmem:[%s7290_s4 + $0x170] sm:$0xff]   ;;  %v211_v56 = vrot.slane %v6297_v29, %v6215_v15  ;;  %v5644_v61 = vld [vmem:[%s7290_s4 + $0x178] sm:$0xff]  }
 0x2fe   :  { %v5641_v54 = vld [vmem:[%s7290_s4 + $0x1f0] sm:$0xff]   ;;  %v565_v60 = vadd.f32 %v6249_v50, %v191_v48  ;;  %v5647_v50 = vld [vmem:[%s7290_s4 + $0x1b8] sm:$0xff]   ;;  %v5668_v48 = vld [vmem:[%s7290_s4 + $0x268] sm:$0xff]  }
 0x2ff   :  { %v756_v2 = vpack.c.bf16 %v740_v0, %v740_v0  ;;  %v758_v4 = vpack.c.bf16 %v742_v1, %v742_v1  ;;  %5182 = vmatpush3.bf16.msra.mxu1 %v5622_v57  ;;  %5204 = vmatpush3.bf16.msra.mxu0 %v5623_v58  ;;  %v5643_v57 = vld [vmem:[%s7290_s4 + $0x1b0] sm:$0xff]   ;;  %v524_v58 = vadd.f32 %v6247_v49, %v183_v47  ;;  %v5646_v49 = vld [vmem:[%s7290_s4 + $0x138] sm:$0xff]   ;;  %v5667_v47 = vld [vmem:[%s7290_s4 + $0x2a0] sm:$0xff]  }
 0x300   :  { %5183 = vmatprep.subr.bf16.mxu1 %v5624_v62  ;;  %5205 = vmatprep.subr.bf16.mxu0 %v5625_v63  ;;  %v5645_v62 = vld [vmem:[%s7290_s4 + $0x1f8] sm:$0xff]  }
 0x301   :  { %v6275_v16 = vpop.f32.mrb[8].mxu1  ;;  %v6277_v17 = vpop.f32.mrb[12].mxu0  ;;  %1903 = vmatprep.mubr.bf16.mxu1 %v756_v2  ;;  %1943 = vmatprep.mubr.bf16.mxu0 %v758_v4  ;;  %v739_v1 = vmax.f32 %v524_v58, 0.0  ;;  %v741_v2 = vmax.f32 %v565_v60, 0.0  ;;  %v5648_v4 = vld [vmem:[%s7290_s4 + $0x240] sm:$0xff]   ;;  %v227_v58 = vrot.slane %v6297_v29, %v6229_v31  ;;  %v5674_v60 = vld [vmem:[%s7290_s4 + $0x230] sm:$0xff]  }
 0x302   :  { %v607_v18 = vpop.f32.mrb[9].mxu1  ;;  %v648_v19 = vpop.f32.mrb[13].mxu0 }
 0x303   :  { %5184 = vmatpush3.bf16.msra.mxu1 %v5626_v5  ;;  %5206 = vmatpush3.bf16.msra.mxu0 %v5627_v7  ;;  %v609_v20 = vpop.f32.mrb[10].mxu1  ;;  %v650_v21 = vpop.f32.mrb[14].mxu0  ;;  %v608_v63 = vadd.f32 %v607_v18, %v203_v55  ;;  %v649_v0 = vadd.f32 %v648_v19, %v211_v56  ;;  %v5649_v5 = vld [vmem:[%s7290_s4 + $0x2c0] sm:$0xff]   ;;  %v755_v18 = vpack.c.bf16 %v739_v1, %v739_v1  ;;  %v5672_v55 = vld [vmem:[%s7290_s4 + $0x270] sm:$0xff]   ;;  %v5678_v1 = vld [vmem:[%s7290_s4 + $0x238] sm:$0xff]  }
 0x304   :  { %v610_v25 = vpop.f32.mrb[11].mxu1  ;;  %v651_v26 = vpop.f32.mrb[15].mxu0  ;;  %5185 = vmatprep.subr.bf16.mxu1 %v5628_v8  ;;  %5207 = vmatprep.subr.bf16.mxu0 %v5629_v9  ;;  %v5650_v9 = vld [vmem:[%s7290_s4 + $0x200] sm:$0xff]   ;;  %v757_v19 = vpack.c.bf16 %v741_v2, %v741_v2  ;;  %v207_v56 = vrot.slane %v6297_v29, %v6204_v12 }
 0x305   :  { %v744_v7 = vmax.f32 %v608_v63, 0.0  ;;  %v746_v8 = vmax.f32 %v649_v0, 0.0  ;;  %v5651_v20 = vld [vmem:[%s7290_s4 + $0x280] sm:$0xff]   ;;  %v5654_v26 = vld [vmem:[%s7290_s4 + $0x208] sm:$0xff]   ;;  %v5676_v63 = vld [vmem:[%s7290_s4 + $0x278] sm:$0xff]  }
 0x306   :  { %v647_v0 = vadd.f32 %v6277_v17, %v207_v56  ;;  %v5679_v17 = vld [vmem:[%s7290_s4 + $0x2b8] sm:$0xff]  }
 0x307   :  { %5186 = vmatpush3.bf16.msra.mxu1 %v5630_v22  ;;  %5208 = vmatpush3.bf16.msra.mxu0 %v5631_v23  ;;  %v760_v21 = vpack.c.bf16 %v744_v7, %v744_v7  ;;  %v5652_v22 = vld [vmem:[%s7290_s4 + $0x248] sm:$0xff]   ;;  %v762_v25 = vpack.c.bf16 %v746_v8, %v746_v8  ;;  %v5682_v8 = vld [vmem:[%s7290_s4 + $0x300] sm:$0xff]  }
 0x308   :  { %5187 = vmatprep.subr.bf16.mxu1 %v5632_v27  ;;  %5209 = vmatprep.subr.bf16.mxu0 %v5633_v28  ;;  %v5653_v23 = vld [vmem:[%s7290_s4 + $0x2c8] sm:$0xff]   ;;  %v5656_v28 = vld [vmem:[%s7290_s4 + $0x250] sm:$0xff]  }
 0x309   :  { %v6316_v38 = vpop.f32.mrb[12].mxu1  ;;  %v728_v39 = vpop.f32.mrb[16].mxu0  ;;  %v5655_v27 = vld [vmem:[%s7290_s4 + $0x288] sm:$0xff]  }
 0x30a   :  { %v6318_v40 = vadd.f32 %v728_v39, %v223_v32  ;;  %v6320_v41 = vpop.f32.mrb[13].mxu1  ;;  %v6322_v42 = vpop.f32.mrb[17].mxu0  ;;  %v5657_v32 = vld [vmem:[%s7290_s4 + $0x2d0] sm:$0xff]   ;;  %v5662_v39 = vld [vmem:[%s7290_s4 + $0x218] sm:$0xff]  }
 0x30b   :  { %5188 = vmatpush3.bf16.msra.mxu1 %v5634_v33  ;;  %5210 = vmatpush3.bf16.msra.mxu0 %v5635_v34  ;;  %v691_v10 = vpop.f32.mrb[14].mxu1  ;;  %v732_v44 = vpop.f32.mrb[18].mxu0  ;;  %v5658_v33 = vld [vmem:[%s7290_s4 + $0x210] sm:$0xff]  }
 0x30c   :  { %v692_v51 = vpop.f32.mrb[15].mxu1  ;;  %v733_v52 = vpop.f32.mrb[19].mxu0  ;;  %5189 = vmatprep.subr.bf16.mxu1 %v5636_v36  ;;  %5211 = vmatprep.subr.bf16.mxu0 %v5637_v37  ;;  %v5659_v34 = vld [vmem:[%s7290_s4 + $0x290] sm:$0xff]   ;;  %v5660_v36 = vld [vmem:[%s7290_s4 + $0x258] sm:$0xff]   ;;  %v5664_v44 = vld [vmem:[%s7290_s4 + $0x260] sm:$0xff]  }
 0x30d   :  { %v5661_v37 = vld [vmem:[%s7290_s4 + $0x2d8] sm:$0xff]   ;;  %v5669_v51 = vld [vmem:[%s7290_s4 + $0x2e8] sm:$0xff]  }
 0x30e   :  { %v5663_v10 = vld [vmem:[%s7290_s4 + $0x298] sm:$0xff]   ;;  %v5670_v52 = vld [vmem:[%s7290_s4 + $0x228] sm:$0xff]  }
 0x30f   :  { %5190 = vmatpush3.bf16.msra.mxu1 %v5638_v45  ;;  %5212 = vmatpush3.bf16.msra.mxu0 %v5639_v46  ;;  %v5665_v45 = vld [vmem:[%s7290_s4 + $0x2e0] sm:$0xff]  }
 0x310   :  { %5191 = vmatprep.subr.bf16.mxu1 %v5640_v53  ;;  %5213 = vmatprep.subr.bf16.mxu0 %v5641_v54  ;;  %v5666_v46 = vld [vmem:[%s7290_s4 + $0x220] sm:$0xff]   ;;  %v199_v53 = vrot.slane %v6297_v29, %v6201_v11  ;;  %v5671_v54 = vld [vmem:[%s7290_s4 + $0x2a8] sm:$0xff]  }
 0x313   :  { %5192 = vmatpush3.bf16.msra.mxu1 %v5642_v13  ;;  %5214 = vmatpush3.bf16.msra.mxu0 %v5643_v57  ;;  %v5673_v13 = vld [vmem:[%s7290_s4 + $0x2f0] sm:$0xff]   ;;  %v219_v57 = vrot.slane %v6297_v29, %v6226_v30 }
 0x314   :  { %5193 = vmatprep.subr.bf16.mxu1 %v5644_v61  ;;  %5215 = vmatprep.subr.bf16.mxu0 %v5645_v62  ;;  %v606_v61 = vadd.f32 %v6275_v16, %v199_v53  ;;  %v5675_v62 = vld [vmem:[%s7290_s4 + $0x2b0] sm:$0xff]   ;;  %v731_v16 = vadd.f32 %v6322_v42, %v227_v58  ;;  %v5703_v53 = vld [vmem:[%s7290_s4 + $0x3a8] sm:$0xff]   ;;  %v5709_v58 = vld [vmem:[%s7290_s4 + $0x3f8] sm:$0xff]  }
 0x316   :  { %v743_v2 = vmax.f32 %v606_v61, 0.0  ;;  %v750_v7 = vmax.f32 %v731_v16, 0.0  ;;  %v5711_v61 = vld [vmem:[%s7290_s4 + $0x3b8] sm:$0xff]  }
 0x317   :  { %5194 = vmatpush3.bf16.msra.mxu1 %v5646_v49  ;;  %5216 = vmatpush3.bf16.msra.mxu0 %v5647_v50  ;;  %v5677_v49 = vld [vmem:[%s7290_s4 + $0x2f8] sm:$0xff]   ;;  %v690_v50 = vadd.f32 %v6320_v41, %v219_v57  ;;  %v5681_v41 = vld [vmem:[%s7290_s4 + $0x3c0] sm:$0xff]  }
 0x318   :  { %5223 = vmatprep.subr.bf16.mxu1 %v5648_v4  ;;  %5245 = vmatprep.subr.bf16.mxu0 %v5649_v5  ;;  %v5680_v4 = vld [vmem:[%s7290_s4 + $0x340] sm:$0xff]   ;;  %v745_v5 = vmax.f32 %v647_v0, 0.0  ;;  %v5708_v57 = vld [vmem:[%s7290_s4 + $0x378] sm:$0xff]  }
 0x319   :  { %v748_v42 = vmax.f32 %v690_v50, 0.0 }
 0x31a   :  { %1904 = vmatmul.mubr.bf16.vlgmr.msra.gmra.mrb[20].mxu1 %v755_v18  ;;  %1944 = vmatmul.mubr.bf16.vlgmr.msra.gmra.mrb[24].mxu0 %v757_v19  ;;  %v5683_v18 = vld [vmem:[%s7290_s4 + $0x380] sm:$0xff]   ;;  %v761_v19 = vpack.c.bf16 %v745_v5, %v745_v5 }
 0x31b   :  { %5224 = vmatpush3.bf16.msra.mxu1 %v5650_v9  ;;  %1983 = vmatprep.mubr.bf16.mxu1 %v760_v21  ;;  %v759_v9 = vpack.c.bf16 %v743_v2, %v743_v2  ;;  %v764_v21 = vpack.c.bf16 %v748_v42, %v748_v42 }
 0x31c   :  { %5246 = vmatpush3.bf16.msra.mxu0 %v5651_v20  ;;  %2023 = vmatprep.mubr.bf16.mxu0 %v762_v25  ;;  %v5684_v20 = vld [vmem:[%s7290_s4 + $0x348] sm:$0xff]  }
 0x31d   :  { %5225 = vmatprep.subr.bf16.mxu1 %v5652_v22  ;;  %5247 = vmatprep.subr.bf16.mxu0 %v5653_v23  ;;  %v5685_v22 = vld [vmem:[%s7290_s4 + $0x3c8] sm:$0xff]   ;;  %v766_v23 = vpack.c.bf16 %v750_v7, %v750_v7 }
 0x31e   :  { %v5686_v25 = vld [vmem:[%s7290_s4 + $0x308] sm:$0xff]  }
 0x31f   :  { %5226 = vmatpush3.bf16.msra.mxu1 %v5654_v26  ;;  %v5687_v26 = vld [vmem:[%s7290_s4 + $0x388] sm:$0xff]  }
 0x320   :  { %5248 = vmatpush3.bf16.msra.mxu0 %v5655_v27  ;;  %5227 = vmatprep.subr.bf16.mxu1 %v5656_v28  ;;  %v5688_v27 = vld [vmem:[%s7290_s4 + $0x350] sm:$0xff]  }
 0x321   :  { %5249 = vmatprep.subr.bf16.mxu0 %v5657_v32  ;;  %v5689_v28 = vld [vmem:[%s7290_s4 + $0x3d0] sm:$0xff]  }
 0x322   :  { %v5690_v32 = vld [vmem:[%s7290_s4 + $0x310] sm:$0xff]  }
 0x323   :  { %5228 = vmatpush3.bf16.msra.mxu1 %v5658_v33  ;;  %v5691_v33 = vld [vmem:[%s7290_s4 + $0x390] sm:$0xff]  }
 0x324   :  { %5250 = vmatpush3.bf16.msra.mxu0 %v5659_v34  ;;  %5229 = vmatprep.subr.bf16.mxu1 %v5660_v36  ;;  %v5692_v34 = vld [vmem:[%s7290_s4 + $0x358] sm:$0xff]  }
 0x325   :  { %5251 = vmatprep.subr.bf16.mxu0 %v5661_v37  ;;  %v5693_v36 = vld [vmem:[%s7290_s4 + $0x3d8] sm:$0xff]  }
 0x326   :  { %v5694_v37 = vld [vmem:[%s7290_s4 + $0x318] sm:$0xff]  }
 0x327   :  { %5230 = vmatpush3.bf16.msra.mxu1 %v5662_v39  ;;  %v5695_v39 = vld [vmem:[%s7290_s4 + $0x398] sm:$0xff]  }
 0x328   :  { %5252 = vmatpush3.bf16.msra.mxu0 %v5663_v10  ;;  %5231 = vmatprep.subr.bf16.mxu1 %v5664_v44  ;;  %v5696_v10 = vld [vmem:[%s7290_s4 + $0x360] sm:$0xff]  }
 0x329   :  { %5253 = vmatprep.subr.bf16.mxu0 %v5665_v45  ;;  %v5697_v44 = vld [vmem:[%s7290_s4 + $0x3e0] sm:$0xff]  }
 0x32a   :  { %v5698_v45 = vld [vmem:[%s7290_s4 + $0x320] sm:$0xff]  }
 0x32b   :  { %5232 = vmatpush3.bf16.msra.mxu1 %v5666_v46  ;;  %v5699_v46 = vld [vmem:[%s7290_s4 + $0x3a0] sm:$0xff]  }
 0x32c   :  { %5254 = vmatpush3.bf16.msra.mxu0 %v5667_v47  ;;  %5233 = vmatprep.subr.bf16.mxu1 %v5668_v48  ;;  %v5700_v47 = vld [vmem:[%s7290_s4 + $0x368] sm:$0xff]  }
 0x32d   :  { %5255 = vmatprep.subr.bf16.mxu0 %v5669_v51  ;;  %v5701_v48 = vld [vmem:[%s7290_s4 + $0x3e8] sm:$0xff]  }
 0x32e   :  { %v5702_v51 = vld [vmem:[%s7290_s4 + $0x328] sm:$0xff]  }
 0x32f   :  { %5234 = vmatpush3.bf16.msra.mxu1 %v5670_v52  ;;  %v215_v52 = vrot.slane %v6297_v29, %v6308_v35  ;;  %v5706_v29 = vld [vmem:[%s7290_s4 + $0x330] sm:$0xff]  }
 0x330   :  { %5256 = vmatpush3.bf16.msra.mxu0 %v5671_v54  ;;  %5235 = vmatprep.subr.bf16.mxu1 %v5672_v55  ;;  %v5704_v54 = vld [vmem:[%s7290_s4 + $0x370] sm:$0xff]  }
 0x331   :  { %5257 = vmatprep.subr.bf16.mxu0 %v5673_v13  ;;  %v5705_v55 = vld [vmem:[%s7290_s4 + $0x3f0] sm:$0xff]   ;;  %v688_v56 = vadd.f32 %v6316_v38, %v215_v52  ;;  %v5710_v38 = vld [vmem:[%s7290_s4 + $0x338] sm:$0xff]  }
 0x332   :  { %v5707_v13 = vld [vmem:[%s7290_s4 + $0x3b0] sm:$0xff]  }
 0x333   :  { %5236 = vmatpush3.bf16.msra.mxu1 %v5674_v60  ;;  %v747_v60 = vmax.f32 %v688_v56, 0.0 }
 0x334   :  { %5258 = vmatpush3.bf16.msra.mxu0 %v5675_v62  ;;  %5237 = vmatprep.subr.bf16.mxu1 %v5676_v63  ;;  %v749_v62 = vmax.f32 %v6318_v40, 0.0  ;;  %v32_v40 = vld [vmem:[%s7287_s1 + $0x53] ss:$0 sm:$0xff] }
 0x335   :  { %5259 = vmatprep.subr.bf16.mxu0 %v5677_v49  ;;  %v763_v63 = vpack.c.bf16 %v747_v60, %v747_v60 }
 0x336   :  { %v765_v0 = vpack.c.bf16 %v749_v62, %v749_v62 }
 0x337   :  { %5238 = vmatpush3.bf16.msra.mxu1 %v5678_v1 }
 0x338   :  { %5260 = vmatpush3.bf16.msra.mxu0 %v5679_v17  ;;  %5267 = vmatprep.subr.bf16.mxu1 %v5680_v4 }
 0x339   :  { %5289 = vmatprep.subr.bf16.mxu0 %v5681_v41 }
 0x33a   :  { %1984 = vmatmul.mubr.bf16.vlgmr.msra.gmra.mrb[24].mxu1 %v759_v9 }
 0x33b   :  { %2024 = vmatmul.mubr.bf16.vlgmr.msra.gmra.mrb[28].mxu0 %v761_v19  ;;  %5268 = vmatpush3.bf16.msra.mxu1 %v5682_v8 }
 0x33c   :  { %2063 = vmatprep.mubr.bf16.mxu1 %v764_v21  ;;  %5290 = vmatpush3.bf16.msra.mxu0 %v5683_v18 }
 0x33d   :  { %2103 = vmatprep.mubr.bf16.mxu0 %v766_v23  ;;  %5269 = vmatprep.subr.bf16.mxu1 %v5684_v20 }
 0x33e   :  { %5291 = vmatprep.subr.bf16.mxu0 %v5685_v22 }
 0x33f   :  { %5270 = vmatpush3.bf16.msra.mxu1 %v5686_v25 }
 0x340   :  { %5292 = vmatpush3.bf16.msra.mxu0 %v5687_v26  ;;  %5271 = vmatprep.subr.bf16.mxu1 %v5688_v27 }
 0x341   :  { %5293 = vmatprep.subr.bf16.mxu0 %v5689_v28 }
 0x343   :  { %5272 = vmatpush3.bf16.msra.mxu1 %v5690_v32 }
 0x344   :  { %5294 = vmatpush3.bf16.msra.mxu0 %v5691_v33  ;;  %5273 = vmatprep.subr.bf16.mxu1 %v5692_v34 }
 0x345   :  { %5295 = vmatprep.subr.bf16.mxu0 %v5693_v36 }
 0x347   :  { %5274 = vmatpush3.bf16.msra.mxu1 %v5694_v37 }
 0x348   :  { %5296 = vmatpush3.bf16.msra.mxu0 %v5695_v39  ;;  %5275 = vmatprep.subr.bf16.mxu1 %v5696_v10 }
 0x349   :  { %5297 = vmatprep.subr.bf16.mxu0 %v5697_v44 }
 0x34b   :  { %5276 = vmatpush3.bf16.msra.mxu1 %v5698_v45 }
 0x34c   :  { %5298 = vmatpush3.bf16.msra.mxu0 %v5699_v46  ;;  %5277 = vmatprep.subr.bf16.mxu1 %v5700_v47 }
 0x34d   :  { %5299 = vmatprep.subr.bf16.mxu0 %v5701_v48 }
 0x34f   :  { %5278 = vmatpush3.bf16.msra.mxu1 %v5702_v51 }
 0x350   :  { %5300 = vmatpush3.bf16.msra.mxu0 %v5703_v53  ;;  %5279 = vmatprep.subr.bf16.mxu1 %v5704_v54 }
 0x351   :  { %5301 = vmatprep.subr.bf16.mxu0 %v5705_v55 }
 0x353   :  { %5280 = vmatpush3.bf16.msra.mxu1 %v5706_v29 }
 0x354   :  { %5302 = vmatpush3.bf16.msra.mxu0 %v5707_v13  ;;  %5281 = vmatprep.subr.bf16.mxu1 %v5708_v57 }
 0x355   :  { %5303 = vmatprep.subr.bf16.mxu0 %v5709_v58 }
 0x357   :  { %5282 = vmatpush3.bf16.msra.mxu1 %v5710_v38 }
 0x358   :  { %5304 = vmatpush3.bf16.msra.mxu0 %v5711_v61  ;;  %5548 = vmatprep.subr.bf16.mxu1 %v5896_v3 }
 0x35a   :  { %2064 = vmatmul.mubr.bf16.vlgmr.msra.gmra.mrb[28].mxu1 %v763_v63 }
 0x35b   :  { %2104 = vmatmul.mubr.bf16.vlgmr.msra.gmra.mrb[32].mxu0 %v765_v0  ;;  %5520 = vmatprep.mubr.msk.f32.mxu1 %vm5897_vm0, %v5898_v6 }
 0x35c   :  { %2541 = vmatprep.mubr.bf16.mxu0 %v5899_v43 }
 0x3cd   :  { %v5151_v49 = vpop.f32.mrb[16].mxu1  ;;  %v5173_v50 = vpop.f32.mrb[20].mxu0 }
 0x3ce   :  { %v5152_v16 = vpop.f32.mrb[17].mxu1  ;;  %v5174_v1 = vpop.f32.mrb[21].mxu0 }
 0x3cf   :  { %v5153_v2 = vadd.f32 %v5152_v16, %v5151_v49  ;;  %v5175_v17 = vadd.f32 %v5174_v1, %v5173_v50  ;;  %v5154_v4 = vpop.f32.mrb[18].mxu1  ;;  %v5176_v5 = vpop.f32.mrb[22].mxu0  ;;  %v2127_v1 = vld [vmem:[%s7287_s1 + $0x60] sm:$0xff] }
 0x3d0   :  { %v5155_v41 = vpop.f32.mrb[19].mxu1  ;;  %v5177_v42 = vpop.f32.mrb[23].mxu0  ;;  %v2130_v4 = vld [vmem:[%s7287_s1 + $0x90] sm:$0xff] }
 0x3d1   :  { %v1826_v7 = vadd.f32 %v5153_v2, %v32_v40  ;;  %v2128_v2 = vld [vmem:[%s7287_s1 + $0x70] sm:$0xff] }
 0x3d3   :  { %v1866_v8 = vadd.f32 %v5175_v17, %v1826_v7  ;;  %v5549_v17 = vpack.c.bf16 %v2128_v2, %v2127_v1  ;;  %v2132_v2 = vld [vmem:[%s7287_s1 + $0xa1] ss:$0 sm:$0xff] }
 0x3d5   :  { %5550 = vmatpush3.bf16.msra.mxu1 %v5549_v17 }
 0x3d6   :  { %5551 = vmatprep.subr.bf16.mxu1 %v5896_v3 }
 0x3ed   :  { %v5195_v9 = vpop.f32.mrb[20].mxu1  ;;  %v5217_v18 = vpop.f32.mrb[24].mxu0 }
 0x3ee   :  { %v5196_v19 = vpop.f32.mrb[21].mxu1  ;;  %v5218_v20 = vpop.f32.mrb[25].mxu0 }
 0x3ef   :  { %v5197_v21 = vadd.f32 %v5196_v19, %v5195_v9  ;;  %v5219_v22 = vadd.f32 %v5218_v20, %v5217_v18  ;;  %v5198_v23 = vpop.f32.mrb[22].mxu1  ;;  %v5220_v25 = vpop.f32.mrb[26].mxu0  ;;  %v33_v9 = vld [vmem:[%s7287_s1 + $0x54] ss:$0 sm:$0xff]  ;;  %v34_v19 = vld [vmem:[%s7287_s1 + $0x55] ss:$0 sm:$0xff] }
 0x3f0   :  { %v5199_v26 = vpop.f32.mrb[23].mxu1  ;;  %v5221_v27 = vpop.f32.mrb[27].mxu0 }
 0x3f1   :  { %v1906_v28 = vadd.f32 %v5197_v21, %v1866_v8 }
 0x3f3   :  { %v1946_v32 = vadd.f32 %v5219_v22, %v1906_v28  ;;  %v2131_v22 = vld [vmem:[%s7287_s1 + $0xa0] ss:$0 sm:$0xff] }
 0x40d   :  { %v5239_v33 = vpop.f32.mrb[24].mxu1 }
 0x40e   :  { %v5261_v34 = vpop.f32.mrb[28].mxu0  ;;  %v5240_v36 = vpop.f32.mrb[25].mxu1 }
 0x40f   :  { %v5241_v37 = vadd.f32 %v5240_v36, %v5239_v33  ;;  %v5262_v39 = vpop.f32.mrb[29].mxu0  ;;  %v5242_v10 = vpop.f32.mrb[26].mxu1 }
 0x410   :  { %v5263_v44 = vadd.f32 %v5262_v39, %v5261_v34  ;;  %v5264_v45 = vpop.f32.mrb[30].mxu0  ;;  %v5243_v46 = vpop.f32.mrb[27].mxu1  ;;  %v4666_v39 = vld [vmem:[%s7289_s3 + $0x100] sm:$0xff] }
 0x411   :  { %v1986_v47 = vadd.f32 %v5241_v37, %v1946_v32  ;;  %v5265_v48 = vpop.f32.mrb[31].mxu0  ;;  %v4674_v10 = vld [vmem:[%s7289_s3 + $0x140] sm:$0xff]  ;;  %v4675_v46 = vld [vmem:[%s7289_s3 + $0x148] sm:$0xff] }
 0x412   :  { %v4701_v45 = vcombine.high %v4666_v39, %v4674_v10 }
 0x413   :  { %v2026_v51 = vadd.f32 %v5263_v44, %v1986_v47  ;;  %v4667_v44 = vld [vmem:[%s7289_s3 + $0x108] sm:$0xff]  ;;  %v4700_v47 = vcombine.low %v4666_v39, %v4674_v10 }
 0x414   :  { %v4702_v48 = vcombine.low %v4667_v44, %v4675_v46  ;;  %2509 = vmatprep.subr.bf16.mxu0 %v4701_v45  ;;  %v4672_v45 = vld [vmem:[%s7289_s3 + $0x130] sm:$0xff] }
 0x415   :  { %2510 = vmatpush1.bf16.msra.mxu0 %v4700_v47  ;;  %v4673_v47 = vld [vmem:[%s7289_s3 + $0x138] sm:$0xff] }
 0x42d   :  { %v5283_v52 = vpop.f32.mrb[28].mxu1 }
 0x42e   :  { %v5305_v53 = vpop.f32.mrb[32].mxu0  ;;  %v5284_v54 = vpop.f32.mrb[29].mxu1 }
 0x42f   :  { %v5285_v55 = vadd.f32 %v5284_v54, %v5283_v52  ;;  %v5306_v29 = vpop.f32.mrb[33].mxu0  ;;  %v5286_v56 = vpop.f32.mrb[30].mxu1  ;;  %v4682_v52 = vld [vmem:[%s7289_s3 + $0x180] sm:$0xff]  ;;  %v4683_v54 = vld [vmem:[%s7289_s3 + $0x188] sm:$0xff] }
 0x430   :  { %v5307_v13 = vadd.f32 %v5306_v29, %v5305_v53  ;;  %v5308_v57 = vpop.f32.mrb[34].mxu0  ;;  %v5287_v58 = vpop.f32.mrb[31].mxu1  ;;  %v4690_v53 = vld [vmem:[%s7289_s3 + $0x1c0] sm:$0xff]  ;;  %v4691_v29 = vld [vmem:[%s7289_s3 + $0x1c8] sm:$0xff] }
 0x431   :  { %v2066_v38 = vadd.f32 %v5285_v55, %v2026_v51  ;;  %v5309_v60 = vpop.f32.mrb[35].mxu0  ;;  %v4703_v51 = vcombine.high %v4667_v44, %v4675_v46  ;;  %v4717_v55 = vcombine.high %v4682_v52, %v4690_v53  ;;  %v4716_v56 = vcombine.low %v4682_v52, %v4690_v53  ;;  %v4668_v58 = vld [vmem:[%s7289_s3 + $0x110] sm:$0xff] }
 0x432   :  { %v4719_v57 = vcombine.high %v4683_v54, %v4691_v29  ;;  %v4669_v60 = vld [vmem:[%s7289_s3 + $0x118] sm:$0xff]  ;;  %v4680_v46 = vld [vmem:[%s7289_s3 + $0x170] sm:$0xff] }
 0x433   :  { %v2106_v61 = vadd.f32 %v5307_v13, %v2066_v38  ;;  %v4718_v13 = vcombine.low %v4683_v54, %v4691_v29  ;;  %2511 = vmatprep.subr.bf16.mxu0 %v4717_v55  ;;  %v4676_v38 = vld [vmem:[%s7289_s3 + $0x150] sm:$0xff]  ;;  %v4713_v53 = vcombine.high %v4672_v45, %v4680_v46 }
 0x434   :  { %2512 = vmatpush1.bf16.msra.mxu0 %v4716_v56  ;;  %v4688_v55 = vld [vmem:[%s7289_s3 + $0x1b0] sm:$0xff]  ;;  %v4689_v56 = vld [vmem:[%s7289_s3 + $0x1b8] sm:$0xff] }
 0x435   :  { %v2111_v62 = vadd.f32 %v2106_v61, %v6020_v59  ;;  %v2129_v59 = vld [vmem:[%s7287_s1 + $0x80] sm:$0xff]  ;;  %v4704_v61 = vcombine.low %v4668_v58, %v4676_v38  ;;  %v4696_v29 = vld [vmem:[%s7289_s3 + $0x1f0] sm:$0xff] }
 0x436   :  { %v5552_v5 = vpack.c.bf16 %v2130_v4, %v2129_v59  ;;  %v2133_v59 = vld [vmem:[%s7287_s1 + $0xa2] ss:$0 sm:$0xff] }
 0x437   :  { %v2112_v63 = vsel %vm35_vm1, %v2111_v62, 0.0 }
 0x438   :  { %2113 = vadd.xlane.f32.xlu1 %v2112_v63  ;;  %5553 = vmatpush3.bf16.msra.mxu1 %v5552_v5  ;;  %v4677_v63 = vld [vmem:[%s7289_s3 + $0x158] sm:$0xff]  ;;  %v4684_v5 = vld [vmem:[%s7289_s3 + $0x190] sm:$0xff] }
 0x439   :  { %2550 = vmatprep.subr.bf16.mxu1 %v4703_v51 }
 0x4c5   :  { %v2114_v0 = vpop.xlane.xlu1 %2113 }
 0x4c6   :  { %v2115_v49 = vmul.f32 0.03125, %v2114_v0  ;;  %v4706_v0 = vcombine.low %v4669_v60, %v4677_v63 }
 0x4c8   :  { %v2116_v50 = vsub.f32 %v2111_v62, %v2115_v49  ;;  %v4705_v62 = vcombine.high %v4668_v58, %v4676_v38  ;;  %v4707_v49 = vcombine.high %v4669_v60, %v4677_v63  ;;  %v4729_v38 = vcombine.high %v4688_v55, %v4696_v29  ;;  %v5712_v63 = vld [vmem:[%s7290_s4 + $0x440] sm:$0xff]  }
 0x4ca   :  { %v2117_v40 = vmul.f32 %v2116_v50, %v2116_v50  ;;  %2591 = vmatprep.subr.bf16.mxu0 %v4705_v62 }
 0x4cc   :  { %v2118_v16 = vsel %vm35_vm1, %v2117_v40, 0.0 }
 0x4cd   :  { %2119 = vadd.xlane.f32.xlu1 %v2118_v16 }
 0x55a   :  { %v2120_v41 = vpop.xlane.xlu1 %2119 }
 0x55b   :  { %v2121_v42 = vmul.f32 0.03125, %v2120_v41  ;;  %v4692_v41 = vld [vmem:[%s7289_s3 + $0x1d0] sm:$0xff] }
 0x55d   :  { %v2122_v7 = vadd.f32 1e-05, %v2121_v42  ;;  %v4685_v42 = vld [vmem:[%s7289_s3 + $0x198] sm:$0xff] }
 0x55f   :  { %5842 = vrsqrt.f32 %v2122_v7  ;;  %v4693_v7 = vld [vmem:[%s7289_s3 + $0x1d8] sm:$0xff] }
 0x569   :  { %v5843_v8 = vpop.eup %5842 }
 0x56a   :  { %v2124_v18 = vmul.f32 %v5843_v8, %v2116_v50 }
 0x56c   :  { %v2125_v20 = vmul.f32 %v2124_v18, %v33_v9  ;;  %v4721_v18 = vcombine.high %v4684_v5, %v4692_v41 }
 0x56e   :  { %v2126_v21 = vadd.f32 %v2125_v20, %v34_v19  ;;  %v4723_v19 = vcombine.high %v4685_v42, %v4693_v7  ;;  %v4670_v20 = vld [vmem:[%s7289_s3 + $0x120] sm:$0xff] }
 0x570   :  { %5521 = vmatmul.mubr.msk.f32.vlgmr.msra.gmra.mrb[32].mxu1 %vm35_vm1, %v2126_v21 }
 0x571   :  { %2582 = vmatprep.mubr.bf16.mxu1 %v5899_v43  ;;  %2551 = vmatpush1.bf16.msra.mxu1 %v4702_v48  ;;  %v4681_v48 = vld [vmem:[%s7289_s3 + $0x178] sm:$0xff] }
 0x572   :  { %2552 = vmatprep.subr.bf16.mxu1 %v4719_v57  ;;  %v4715_v54 = vcombine.high %v4673_v47, %v4681_v48  ;;  %v4712_v57 = vcombine.low %v4672_v45, %v4680_v46  ;;  %v4714_v58 = vcombine.low %v4673_v47, %v4681_v48 }
 0x575   :  { %2553 = vmatpush1.bf16.msra.mxu1 %v4718_v13  ;;  %v4697_v13 = vld [vmem:[%s7289_s3 + $0x1f8] sm:$0xff] }
 0x576   :  { %2632 = vmatprep.subr.bf16.mxu1 %v4707_v49  ;;  %v4731_v60 = vcombine.high %v4689_v56, %v4697_v13  ;;  %v4730_v62 = vcombine.low %v4689_v56, %v4697_v13  ;;  %v5714_v49 = vld [vmem:[%s7290_s4 + $0x400] sm:$0xff]  }
 0x643   :  { %v2206_v23 = vpop.f32.mrb[32].mxu1 }
 0x644   :  { %v2207_v25 = vadd.f32 %v2206_v23, %v2131_v22  ;;  %v5522_v26 = vpop.f32.mrb[33].mxu1  ;;  %v4671_v22 = vld [vmem:[%s7289_s3 + $0x128] sm:$0xff] }
 0x645   :  { %v4679_v23 = vld [vmem:[%s7289_s3 + $0x168] sm:$0xff]  ;;  %v4722_v26 = vcombine.low %v4685_v42, %v4693_v7  ;;  %v5726_v42 = vld [vmem:[%s7290_s4 + $0x418] sm:$0xff]  }
 0x646   :  { %v2210_v27 = vadd.f32 %v2207_v25, %v2126_v21  ;;  %v4678_v21 = vld [vmem:[%s7289_s3 + $0x160] sm:$0xff]  ;;  %v4720_v25 = vcombine.low %v4684_v5, %v4692_v41  ;;  %v4710_v39 = vcombine.low %v4671_v22, %v4679_v23  ;;  %v5724_v5 = vld [vmem:[%s7290_s4 + $0x458] sm:$0xff]  }
 0x647   :  { %v5725_v41 = vld [vmem:[%s7290_s4 + $0x4d8] sm:$0xff]  }
 0x648   :  { %v2211_v28 = vsel %vm35_vm1, %v2210_v27, 0.0  ;;  %v5727_v7 = vld [vmem:[%s7290_s4 + $0x498] sm:$0xff]  }
 0x649   :  { %2212 = vadd.xlane.f32.xlu0 %v2211_v28  ;;  %v4711_v28 = vcombine.high %v4671_v22, %v4679_v23  ;;  %v5733_v22 = vld [vmem:[%s7290_s4 + $0x4e8] sm:$0xff]  }
 0x64a   :  { %v5734_v23 = vld [vmem:[%s7290_s4 + $0x428] sm:$0xff]  }
 0x6d6   :  { %v2213_v32 = vpop.xlane.xlu0 %2212 }
 0x6d7   :  { %v2214_v33 = vmul.f32 0.03125, %v2213_v32  ;;  %v4686_v32 = vld [vmem:[%s7289_s3 + $0x1a0] sm:$0xff] }
 0x6d9   :  { %v2215_v34 = vsub.f32 %v2210_v27, %v2214_v33  ;;  %v4709_v27 = vcombine.high %v4670_v20, %v4678_v21  ;;  %v4694_v33 = vld [vmem:[%s7289_s3 + $0x1e0] sm:$0xff] }
 0x6da   :  { %v4725_v10 = vcombine.high %v4686_v32, %v4694_v33  ;;  %v4724_v51 = vcombine.low %v4686_v32, %v4694_v33  ;;  %v5739_v32 = vld [vmem:[%s7290_s4 + $0x4b0] sm:$0xff]   ;;  %v5740_v33 = vld [vmem:[%s7290_s4 + $0x478] sm:$0xff]  }
 0x6db   :  { %v2216_v36 = vmul.f32 %v2215_v34, %v2215_v34 }
 0x6dd   :  { %v2217_v37 = vsel %vm35_vm1, %v2216_v36, 0.0  ;;  %v4695_v36 = vld [vmem:[%s7289_s3 + $0x1e8] sm:$0xff] }
 0x6de   :  { %2218 = vadd.xlane.f32.xlu1 %v2217_v37  ;;  %v4708_v37 = vcombine.low %v4670_v20, %v4678_v21  ;;  %v5731_v20 = vld [vmem:[%s7290_s4 + $0x4a0] sm:$0xff]   ;;  %v5732_v21 = vld [vmem:[%s7290_s4 + $0x468] sm:$0xff]  }
 0x76b   :  { %v2219_v50 = vpop.xlane.xlu1 %2218 }
 0x76c   :  { %v2220_v40 = vmul.f32 0.03125, %v2219_v50  ;;  %v5715_v50 = vld [vmem:[%s7290_s4 + $0x480] sm:$0xff]  }
 0x76e   :  { %v2221_v16 = vadd.f32 1e-05, %v2220_v40  ;;  %v5716_v40 = vld [vmem:[%s7290_s4 + $0x448] sm:$0xff]  }
 0x770   :  { %5844 = vrsqrt.f32 %v2221_v16  ;;  %v5718_v16 = vld [vmem:[%s7290_s4 + $0x408] sm:$0xff]  }
 0x77a   :  { %v5845_v1 = vpop.eup %5844 }
 0x77b   :  { %v2223_v17 = vmul.f32 %v5845_v1, %v2215_v34  ;;  %v4687_v34 = vld [vmem:[%s7289_s3 + $0x1a8] sm:$0xff]  ;;  %s5905_s3 = smov [#allocation2]  }
 0x77c   :  { %v4727_v44 = vcombine.high %v4687_v34, %v4695_v36  ;;  %v4726_v52 = vcombine.low %v4687_v34, %v4695_v36  ;;  %v5719_v1 = vld [vmem:[%s7290_s4 + $0x488] sm:$0xff]   ;;  %v5741_v34 = vld [vmem:[%s7290_s4 + $0x4f8] sm:$0xff]   ;;  %s4487_s28 = sshll.u32 %s5905_s3, 4  ;;  %s4488_s28 = int_to_ptr.vmem [resolvable:$true] %s4487_s28 }
 0x77d   :  { %v2224_v4 = vmul.f32 %v2223_v17, %v2132_v2  ;;  %v5720_v2 = vld [vmem:[%s7290_s4 + $0x450] sm:$0xff]   ;;  %v5742_v36 = vld [vmem:[%s7290_s4 + $0x438] sm:$0xff]   ;;  %p5877_p1 = scmp.lt.s32.totalorder %s4488_s28, %s4488_s28 }
 0x77e   :  { %v5721_v17 = vld [vmem:[%s7290_s4 + $0x4d0] sm:$0xff]  }
 0x77f   :  { %v6662_v8 = vadd.f32 %v2224_v4, %v2133_v59  ;;  %v5722_v59 = vld [vmem:[%s7290_s4 + $0x410] sm:$0xff]  }
 0x780   :  { %v5723_v4 = vld [vmem:[%s7290_s4 + $0x490] sm:$0xff]  }
 0x781   :  { %v6666_v9 = vpack.c.bf16 %v6662_v8, %v6662_v8 }
 0x783   :  { %4732 = vmatmul.mubr.msk.bf16.vlgmr.msra.gmra.mrb[36].mxu0 %vm35_vm1, %v6666_v9  ;;  %4733 = vmatmul.mubr.msk.bf16.vlgmr.msra.gmra.mrb[36].mxu1 %vm35_vm1, %v6666_v9 }
 0x784   :  { %2592 = vmatpush1.bf16.msra.mxu0 %v4704_v61  ;;  %2633 = vmatpush1.bf16.msra.mxu1 %v4706_v0  ;;  %v4728_v61 = vcombine.low %v4688_v55, %v4696_v29  ;;  %v5713_v0 = vld [vmem:[%s7290_s4 + $0x4c0] sm:$0xff]  }
 0x785   :  { %2593 = vmatprep.subr.bf16.mxu0 %v4721_v18  ;;  %2634 = vmatprep.subr.bf16.mxu1 %v4723_v19  ;;  %v5729_v18 = vld [vmem:[%s7290_s4 + $0x4e0] sm:$0xff]  }
 0x786   :  { %2623 = vmatprep.mubr.bf16.mxu0 %v5899_v43  ;;  %2664 = vmatprep.mubr.bf16.mxu1 %v5899_v43  ;;  %v5730_v19 = vld [vmem:[%s7290_s4 + $0x420] sm:$0xff]  }
 0x788   :  { %2594 = vmatpush1.bf16.msra.mxu0 %v4720_v25  ;;  %2635 = vmatpush1.bf16.msra.mxu1 %v4722_v26  ;;  %v5735_v25 = vld [vmem:[%s7290_s4 + $0x4a8] sm:$0xff]   ;;  %v5736_v26 = vld [vmem:[%s7290_s4 + $0x470] sm:$0xff]  }
 0x789   :  { %2673 = vmatprep.subr.bf16.mxu0 %v4709_v27  ;;  %2714 = vmatprep.subr.bf16.mxu1 %v4711_v28  ;;  %v5737_v27 = vld [vmem:[%s7290_s4 + $0x4f0] sm:$0xff]  }
 0x78a   :  { %v5738_v28 = vld [vmem:[%s7290_s4 + $0x430] sm:$0xff]  }
 0x78b   :  { %4734 = vmatmul.mubr.msk.bf16.vlgmr.msra.gmra.mrb[40].mxu0 %vm35_vm1, %v6666_v9  ;;  %4735 = vmatmul.mubr.msk.bf16.vlgmr.msra.gmra.mrb[40].mxu1 %vm35_vm1, %v6666_v9 }
 0x78c   :  { %2674 = vmatpush1.bf16.msra.mxu0 %v4708_v37  ;;  %2715 = vmatpush1.bf16.msra.mxu1 %v4710_v39  ;;  %v5743_v37 = vld [vmem:[%s7290_s4 + $0x4b8] sm:$0xff]   ;;  %v5744_v39 = vld [vmem:[%s7290_s4 + $0x540] sm:$0xff]  }
 0x78d   :  { %2675 = vmatprep.subr.bf16.mxu0 %v4725_v10  ;;  %2716 = vmatprep.subr.bf16.mxu1 %v4727_v44  ;;  %v5745_v10 = vld [vmem:[%s7290_s4 + $0x5c0] sm:$0xff]  }
 0x78e   :  { %2705 = vmatprep.mubr.bf16.mxu0 %v5899_v43  ;;  %2746 = vmatprep.mubr.bf16.mxu1 %v5899_v43  ;;  %v6843_v44 = vld [vmem:[%s7288_s2 + $0x1] ss:$2 sm:$0xff] }
 0x78f   :  { %v2269_v45 = vrot.slane %v6843_v44, %v6201_v11  ;;  %v2277_v46 = vrot.slane %v6843_v44, %v6204_v12  ;;  %v2273_v47 = vrot.slane %v6843_v44, %v6212_v14  ;;  %v2281_v48 = vrot.slane %v6843_v44, %v6215_v15 }
 0x790   :  { %2676 = vmatpush1.bf16.msra.mxu0 %v4724_v51  ;;  %2717 = vmatpush1.bf16.msra.mxu1 %v4726_v52 }
 0x791   :  { %2755 = vmatprep.subr.bf16.mxu0 %v4713_v53  ;;  %2796 = vmatprep.subr.bf16.mxu1 %v4715_v54 }
 0x793   :  { %4736 = vmatmul.mubr.msk.bf16.vlgmr.msra.gmra.mrb[44].mxu0 %vm35_vm1, %v6666_v9  ;;  %4737 = vmatmul.mubr.msk.bf16.vlgmr.msra.gmra.mrb[44].mxu1 %vm35_vm1, %v6666_v9 }
 0x794   :  { %2756 = vmatpush1.bf16.msra.mxu0 %v4712_v57  ;;  %2797 = vmatpush1.bf16.msra.mxu1 %v4714_v58 }
 0x795   :  { %2757 = vmatprep.subr.bf16.mxu0 %v4729_v38  ;;  %2798 = vmatprep.subr.bf16.mxu1 %v4731_v60 }
 0x796   :  { %2787 = vmatprep.mubr.bf16.mxu0 %v5899_v43  ;;  %2828 = vmatprep.mubr.bf16.mxu1 %v5899_v43  ;;  %v5717_v43 = vld [vmem:[%s7290_s4 + $0x4c8] sm:$0xff]  }
 0x798   :  { %2758 = vmatpush1.bf16.msra.mxu0 %v4728_v61  ;;  %2799 = vmatpush1.bf16.msra.mxu1 %v4730_v62 }
 0x799   :  { %5316 = vmatprep.subr.bf16.mxu0 %v5712_v63  ;;  %5338 = vmatprep.subr.bf16.mxu1 %v5713_v0 }
 0x79b   :  { %4738 = vmatmul.mubr.msk.bf16.vlgmr.msra.gmra.mrb[48].mxu0 %vm35_vm1, %v6666_v9  ;;  %4739 = vmatmul.mubr.msk.bf16.vlgmr.msra.gmra.mrb[48].mxu1 %vm35_vm1, %v6666_v9  ;;  %v5728_v9 = vld [vmem:[%s7290_s4 + $0x460] sm:$0xff]  }
 0x79c   :  { %5317 = vmatpush3.bf16.msra.mxu0 %v5714_v49  ;;  %5339 = vmatpush3.bf16.msra.mxu1 %v5715_v50 }
 0x79d   :  { %5318 = vmatprep.subr.bf16.mxu0 %v5716_v40  ;;  %5340 = vmatprep.subr.bf16.mxu1 %v5717_v43  ;;  %v2289_v40 = vrot.slane %v6843_v44, %v6226_v30  ;;  %v2297_v43 = vrot.slane %v6843_v44, %v6229_v31 }
 0x7a0   :  { %5319 = vmatpush3.bf16.msra.mxu0 %v5718_v16  ;;  %5341 = vmatpush3.bf16.msra.mxu1 %v5719_v1  ;;  %v5746_v16 = vld [vmem:[%s7290_s4 + $0x500] sm:$0xff]  }
 0x7a1   :  { %5320 = vmatprep.subr.bf16.mxu0 %v5720_v2  ;;  %5342 = vmatprep.subr.bf16.mxu1 %v5721_v17  ;;  %v5747_v1 = vld [vmem:[%s7290_s4 + $0x580] sm:$0xff]  }
 0x7a4   :  { %5321 = vmatpush3.bf16.msra.mxu0 %v5722_v59  ;;  %5343 = vmatpush3.bf16.msra.mxu1 %v5723_v4  ;;  %v5748_v59 = vld [vmem:[%s7290_s4 + $0x548] sm:$0xff]  }
 0x7a5   :  { %5322 = vmatprep.subr.bf16.mxu0 %v5724_v5  ;;  %5344 = vmatprep.subr.bf16.mxu1 %v5725_v41  ;;  %v5749_v4 = vld [vmem:[%s7290_s4 + $0x5c8] sm:$0xff]  }
 0x7a8   :  { %5323 = vmatpush3.bf16.msra.mxu0 %v5726_v42  ;;  %5345 = vmatpush3.bf16.msra.mxu1 %v5727_v7 }
 0x7a9   :  { %5324 = vmatprep.subr.bf16.mxu0 %v5728_v9  ;;  %5346 = vmatprep.subr.bf16.mxu1 %v5729_v18 }
 0x7ac   :  { %5325 = vmatpush3.bf16.msra.mxu0 %v5730_v19  ;;  %5347 = vmatpush3.bf16.msra.mxu1 %v5731_v20 }
 0x7ad   :  { %5326 = vmatprep.subr.bf16.mxu0 %v5732_v21  ;;  %5348 = vmatprep.subr.bf16.mxu1 %v5733_v22  ;;  %v5750_v21 = vld [vmem:[%s7290_s4 + $0x508] sm:$0xff]  }
 0x7ae   :  { %v5751_v22 = vld [vmem:[%s7290_s4 + $0x588] sm:$0xff]  }
 0x7b0   :  { %5327 = vmatpush3.bf16.msra.mxu0 %v5734_v23  ;;  %5349 = vmatpush3.bf16.msra.mxu1 %v5735_v25 }
 0x7b1   :  { %5328 = vmatprep.subr.bf16.mxu0 %v5736_v26  ;;  %5350 = vmatprep.subr.bf16.mxu1 %v5737_v27  ;;  %v5752_v26 = vld [vmem:[%s7290_s4 + $0x550] sm:$0xff]  }
 0x7b2   :  { %v5753_v27 = vld [vmem:[%s7290_s4 + $0x5d0] sm:$0xff]  }
 0x7b4   :  { %5329 = vmatpush3.bf16.msra.mxu0 %v5738_v28  ;;  %5351 = vmatpush3.bf16.msra.mxu1 %v5739_v32 }
 0x7b5   :  { %5330 = vmatprep.subr.bf16.mxu0 %v5740_v33  ;;  %5352 = vmatprep.subr.bf16.mxu1 %v5741_v34 }
 0x7b8   :  { %5331 = vmatpush3.bf16.msra.mxu0 %v5742_v36  ;;  %5353 = vmatpush3.bf16.msra.mxu1 %v5743_v37  ;;  %v5754_v36 = vld [vmem:[%s7290_s4 + $0x510] sm:$0xff]  }
 0x7b9   :  { %5360 = vmatprep.subr.bf16.mxu0 %v5744_v39  ;;  %5382 = vmatprep.subr.bf16.mxu1 %v5745_v10  ;;  %v5755_v37 = vld [vmem:[%s7290_s4 + $0x590] sm:$0xff]   ;;  %v5756_v39 = vld [vmem:[%s7290_s4 + $0x558] sm:$0xff]  }
 0x7ba   :  { %v5757_v10 = vld [vmem:[%s7290_s4 + $0x5d8] sm:$0xff]  }
 0x856   :  { %v2543_v51 = vpop.f32.mrb[36].mxu0  ;;  %v2584_v52 = vpop.f32.mrb[36].mxu1 }
 0x857   :  { %v2544_v53 = vadd.f32 %v2543_v51, %v2269_v45  ;;  %v2585_v54 = vadd.f32 %v2584_v52, %v2277_v46  ;;  %v2545_v55 = vpop.f32.mrb[37].mxu0  ;;  %v2586_v29 = vpop.f32.mrb[37].mxu1 }
 0x858   :  { %v2546_v56 = vadd.f32 %v2545_v55, %v2273_v47  ;;  %v2587_v13 = vadd.f32 %v2586_v29, %v2281_v48  ;;  %v2547_v57 = vpop.f32.mrb[38].mxu0  ;;  %v2588_v58 = vpop.f32.mrb[38].mxu1 }
 0x859   :  { %v2837_v38 = vmax.f32 %v2544_v53, 0.0  ;;  %v2839_v60 = vmax.f32 %v2585_v54, 0.0  ;;  %v2548_v61 = vpop.f32.mrb[39].mxu0  ;;  %v2589_v62 = vpop.f32.mrb[39].mxu1  ;;  %v5758_v53 = vld [vmem:[%s7290_s4 + $0x518] sm:$0xff]  }
 0x85a   :  { %v2838_v63 = vmax.f32 %v2546_v56, 0.0  ;;  %v2840_v0 = vmax.f32 %v2587_v13, 0.0  ;;  %v5759_v54 = vld [vmem:[%s7290_s4 + $0x598] sm:$0xff]   ;;  %v5760_v56 = vld [vmem:[%s7290_s4 + $0x560] sm:$0xff]   ;;  %v5764_v61 = vld [vmem:[%s7290_s4 + $0x568] sm:$0xff]  }
 0x85b   :  { %v2853_v2 = vpack.c.bf16 %v2837_v38, %v2837_v38  ;;  %v2855_v17 = vpack.c.bf16 %v2839_v60, %v2839_v60  ;;  %v5761_v13 = vld [vmem:[%s7290_s4 + $0x5e0] sm:$0xff]   ;;  %v6916_v57 = vld [vmem:[%s7288_s2 + $0x11] ss:$2 sm:$0xff]  ;;  %v5765_v62 = vld [vmem:[%s7290_s4 + $0x5e8] sm:$0xff]   ;;  %s5872_s2 = scalar_lea.vmem %s4488_s28, 128 }
 0x85c   :  { %v2854_v49 = vpack.c.bf16 %v2838_v63, %v2838_v63  ;;  %v2856_v50 = vpack.c.bf16 %v2840_v0, %v2840_v0  ;;  %v2325_v58 = vrot.slane %v6916_v57, %v6286_v24  ;;  %v5762_v38 = vld [vmem:[%s7290_s4 + $0x520] sm:$0xff]   ;;  %p5873_p0 = scmp.ne.s32.totalorder %s4488_s28, %s5872_s2  ;;  %p5878_p2 = scmp.lt.s32.totalorder %s5872_s2, %s5872_s2 }
 0x85d   :  { %v5763_v60 = vld [vmem:[%s7290_s4 + $0x5a0] sm:$0xff]  }
 0x85e   :  { %v6869_v5 = vpop.f32.mrb[40].mxu0  ;;  %v6871_v41 = vpop.f32.mrb[40].mxu1  ;;  %3926 = vmatprep.mubr.bf16.mxu0 %v2854_v49  ;;  %3966 = vmatprep.mubr.bf16.mxu1 %v2856_v50  ;;  %p5879_p3 = por %p5878_p2, %p5877_p1 }
 0x85f   :  { %v2627_v42 = vpop.f32.mrb[41].mxu0  ;;  %v2668_v7 = vpop.f32.mrb[41].mxu1  ;;  %3927 = vmatmul.mubr.bf16.vlgmr.msra.gmra.mrb[52].mxu0 %v2853_v2  ;;  %3967 = vmatmul.mubr.bf16.vlgmr.msra.gmra.mrb[52].mxu1 %v2855_v17  ;;  %v5767_v2 = vld [vmem:[%s7290_s4 + $0x5a8] sm:$0xff]   ;;  %v2285_v17 = vrot.slane %v6843_v44, %v6308_v35 }
 0x860   :  { %v2628_v9 = vadd.f32 %v2627_v42, %v2289_v40  ;;  %v2669_v18 = vadd.f32 %v2668_v7, %v2297_v43  ;;  %5361 = vmatpush3.bf16.msra.mxu0 %v5746_v16  ;;  %5383 = vmatpush3.bf16.msra.mxu1 %v5747_v1  ;;  %v2629_v19 = vpop.f32.mrb[42].mxu0  ;;  %v2670_v20 = vpop.f32.mrb[42].mxu1  ;;  %v5766_v1 = vld [vmem:[%s7290_s4 + $0x528] sm:$0xff]   ;;  %v5768_v7 = vld [vmem:[%s7290_s4 + $0x570] sm:$0xff]   ;;  %p5880_p4 = pnand %p5879_p3, %p5873_p0 }
 0x861   :  { %v2630_v23 = vpop.f32.mrb[43].mxu0  ;;  %v2671_v25 = vpop.f32.mrb[43].mxu1  ;;  %5362 = vmatprep.subr.bf16.mxu0 %v5748_v59  ;;  %5384 = vmatprep.subr.bf16.mxu1 %v5749_v4  ;;  %v2293_v59 = vrot.slane %v6843_v44, %v6286_v24  ;;  %v2313_v19 = vrot.slane %v6916_v57, %v6215_v15  ;;  %v5770_v24 = vld [vmem:[%s7290_s4 + $0x530] sm:$0xff]   ;;  %v2626_v20 = vadd.f32 %v6869_v5, %v2285_v17  ;;  %v5772_v15 = vld [vmem:[%s7290_s4 + $0x578] sm:$0xff]   ;;  %v5798_v17 = vld [vmem:[%s7290_s4 + $0x628] sm:$0xff]  }
 0x862   :  { %v2842_v28 = vmax.f32 %v2628_v9, 0.0  ;;  %v2844_v32 = vmax.f32 %v2669_v18, 0.0  ;;  %v5769_v9 = vld [vmem:[%s7290_s4 + $0x5f0] sm:$0xff]   ;;  %v2305_v18 = vrot.slane %v6916_v57, %v6212_v14  ;;  %v5774_v5 = vld [vmem:[%s7290_s4 + $0x538] sm:$0xff]  }
 0x863   :  { %v5771_v44 = vld [vmem:[%s7290_s4 + $0x5b0] sm:$0xff]  }
 0x864   :  { %v2858_v33 = vpack.c.bf16 %v2842_v28, %v2842_v28  ;;  %v2860_v34 = vpack.c.bf16 %v2844_v32, %v2844_v32  ;;  %5363 = vmatpush3.bf16.msra.mxu0 %v5750_v21  ;;  %5385 = vmatpush3.bf16.msra.mxu1 %v5751_v22  ;;  %v2667_v21 = vadd.f32 %v6871_v41, %v2293_v59  ;;  %v5773_v22 = vld [vmem:[%s7290_s4 + $0x5f8] sm:$0xff]   ;;  %v5776_v28 = vld [vmem:[%s7290_s4 + $0x640] sm:$0xff]  }
 0x865   :  { %5364 = vmatprep.subr.bf16.mxu0 %v5752_v26  ;;  %5386 = vmatprep.subr.bf16.mxu1 %v5753_v27  ;;  %v5775_v41 = vld [vmem:[%s7290_s4 + $0x5b8] sm:$0xff]   ;;  %v2841_v26 = vmax.f32 %v2626_v20, 0.0  ;;  %v5777_v32 = vld [vmem:[%s7290_s4 + $0x6c0] sm:$0xff]   ;;  %v2301_v59 = vrot.slane %v6916_v57, %v6201_v11 }
 0x866   :  { %v6897_v45 = vpop.f32.mrb[44].mxu0  ;;  %v6899_v46 = vpop.f32.mrb[44].mxu1  ;;  %4006 = vmatprep.mubr.bf16.mxu0 %v2858_v33  ;;  %4046 = vmatprep.mubr.bf16.mxu1 %v2860_v34  ;;  %v2843_v27 = vmax.f32 %v2667_v21, 0.0 }
 0x867   :  { %v2709_v47 = vpop.f32.mrb[45].mxu0  ;;  %v2750_v48 = vpop.f32.mrb[45].mxu1 }
 0x868   :  { %5365 = vmatpush3.bf16.msra.mxu0 %v5754_v36  ;;  %5387 = vmatpush3.bf16.msra.mxu1 %v5755_v37  ;;  %v2711_v51 = vpop.f32.mrb[46].mxu0  ;;  %v2752_v52 = vpop.f32.mrb[46].mxu1  ;;  %v2710_v23 = vadd.f32 %v2709_v47, %v2305_v18  ;;  %v2751_v25 = vadd.f32 %v2750_v48, %v2313_v19  ;;  %v5778_v36 = vld [vmem:[%s7290_s4 + $0x600] sm:$0xff]   ;;  %v2857_v37 = vpack.c.bf16 %v2841_v26, %v2841_v26  ;;  %v5780_v48 = vld [vmem:[%s7290_s4 + $0x648] sm:$0xff]  }
 0x869   :  { %v2712_v55 = vpop.f32.mrb[47].mxu0  ;;  %v2753_v29 = vpop.f32.mrb[47].mxu1  ;;  %5366 = vmatprep.subr.bf16.mxu0 %v5756_v39  ;;  %5388 = vmatprep.subr.bf16.mxu1 %v5757_v10  ;;  %v2859_v39 = vpack.c.bf16 %v2843_v27, %v2843_v27  ;;  %v5779_v10 = vld [vmem:[%s7290_s4 + $0x680] sm:$0xff]   ;;  %v5781_v51 = vld [vmem:[%s7290_s4 + $0x6c8] sm:$0xff]   ;;  %v2321_v18 = vrot.slane %v6916_v57, %v6226_v30  ;;  %v2329_v19 = vrot.slane %v6916_v57, %v6229_v31  ;;  %v5804_v30 = vld [vmem:[%s7290_s4 + $0x678] sm:$0xff]  }
 0x86a   :  { %v2846_v33 = vmax.f32 %v2710_v23, 0.0  ;;  %v2848_v34 = vmax.f32 %v2751_v25, 0.0  ;;  %v5784_v55 = vld [vmem:[%s7290_s4 + $0x650] sm:$0xff]   ;;  %v5805_v31 = vld [vmem:[%s7290_s4 + $0x6f8] sm:$0xff]   ;;  %v5808_v23 = vld [vmem:[%s7290_s4 + $0x740] sm:$0xff]  }
 0x86b   :  { %v5785_v29 = vld [vmem:[%s7290_s4 + $0x6d0] sm:$0xff]   ;;  %v5811_v27 = vld [vmem:[%s7290_s4 + $0x780] sm:$0xff]  }
 0x86c   :  { %5367 = vmatpush3.bf16.msra.mxu0 %v5758_v53  ;;  %5389 = vmatpush3.bf16.msra.mxu1 %v5759_v54  ;;  %v2862_v47 = vpack.c.bf16 %v2846_v33, %v2846_v33  ;;  %v2864_v52 = vpack.c.bf16 %v2848_v34, %v2848_v34  ;;  %v5782_v53 = vld [vmem:[%s7290_s4 + $0x608] sm:$0xff]  }
 0x86d   :  { %5368 = vmatprep.subr.bf16.mxu0 %v5760_v56  ;;  %5390 = vmatprep.subr.bf16.mxu1 %v5761_v13  ;;  %v5783_v54 = vld [vmem:[%s7290_s4 + $0x688] sm:$0xff]   ;;  %v5786_v56 = vld [vmem:[%s7290_s4 + $0x610] sm:$0xff]  }
 0x86e   :  { %v6932_v63 = vpop.f32.mrb[48].mxu0  ;;  %v2830_v0 = vpop.f32.mrb[48].mxu1  ;;  %v5787_v13 = vld [vmem:[%s7290_s4 + $0x690] sm:$0xff]   ;;  %v5813_v34 = vld [vmem:[%s7290_s4 + $0x7c8] sm:$0xff]  }
 0x86f   :  { %v6934_v49 = vadd.f32 %v2830_v0, %v2325_v58  ;;  %v6936_v50 = vpop.f32.mrb[49].mxu0  ;;  %v6938_v40 = vpop.f32.mrb[49].mxu1  ;;  %v5788_v58 = vld [vmem:[%s7290_s4 + $0x658] sm:$0xff]   ;;  %v5793_v0 = vld [vmem:[%s7290_s4 + $0x6e0] sm:$0xff]  }
 0x870   :  { %5369 = vmatpush3.bf16.msra.mxu0 %v5762_v38  ;;  %5391 = vmatpush3.bf16.msra.mxu1 %v5763_v60  ;;  %v2793_v43 = vpop.f32.mrb[50].mxu0  ;;  %v2834_v16 = vpop.f32.mrb[50].mxu1  ;;  %v5789_v38 = vld [vmem:[%s7290_s4 + $0x6d8] sm:$0xff]   ;;  %v2792_v21 = vadd.f32 %v6936_v50, %v2321_v18  ;;  %v5809_v50 = vld [vmem:[%s7290_s4 + $0x7c0] sm:$0xff]  }
 0x871   :  { %v2794_v4 = vpop.f32.mrb[51].mxu0  ;;  %v2835_v42 = vpop.f32.mrb[51].mxu1  ;;  %5370 = vmatprep.subr.bf16.mxu0 %v5764_v61  ;;  %5392 = vmatprep.subr.bf16.mxu1 %v5765_v62  ;;  %v5790_v60 = vld [vmem:[%s7290_s4 + $0x618] sm:$0xff]   ;;  %v5792_v62 = vld [vmem:[%s7290_s4 + $0x660] sm:$0xff]  }
 0x872   :  { %v5791_v61 = vld [vmem:[%s7290_s4 + $0x698] sm:$0xff]   ;;  %v5794_v43 = vld [vmem:[%s7290_s4 + $0x620] sm:$0xff]   ;;  %v5799_v4 = vld [vmem:[%s7290_s4 + $0x6a8] sm:$0xff]  }
 0x873   :  { %v5795_v16 = vld [vmem:[%s7290_s4 + $0x6a0] sm:$0xff]   ;;  %v5800_v42 = vld [vmem:[%s7290_s4 + $0x670] sm:$0xff]  }
 0x874   :  { %5371 = vmatpush3.bf16.msra.mxu0 %v5766_v1  ;;  %5393 = vmatpush3.bf16.msra.mxu1 %v5767_v2  ;;  %v5796_v1 = vld [vmem:[%s7290_s4 + $0x668] sm:$0xff]  }
 0x875   :  { %5372 = vmatprep.subr.bf16.mxu0 %v5768_v7  ;;  %5394 = vmatprep.subr.bf16.mxu1 %v5769_v9  ;;  %v5797_v2 = vld [vmem:[%s7290_s4 + $0x6e8] sm:$0xff]   ;;  %v2309_v7 = vrot.slane %v6916_v57, %v6204_v12  ;;  %v5801_v9 = vld [vmem:[%s7290_s4 + $0x6f0] sm:$0xff]  }
 0x876   :  { %v5803_v12 = vld [vmem:[%s7290_s4 + $0x6b0] sm:$0xff]  }
 0x877   :  { %v2749_v20 = vadd.f32 %v6899_v46, %v2309_v7  ;;  %v5807_v46 = vld [vmem:[%s7290_s4 + $0x6b8] sm:$0xff]  }
 0x878   :  { %5373 = vmatpush3.bf16.msra.mxu0 %v5770_v24  ;;  %5395 = vmatpush3.bf16.msra.mxu1 %v5771_v44  ;;  %v5802_v24 = vld [vmem:[%s7290_s4 + $0x630] sm:$0xff]   ;;  %v2708_v44 = vadd.f32 %v6897_v45, %v2301_v59  ;;  %v2833_v45 = vadd.f32 %v6938_v40, %v2329_v19  ;;  %v2850_v40 = vmax.f32 %v2792_v21, 0.0 }
 0x879   :  { %5374 = vmatprep.subr.bf16.mxu0 %v5772_v15  ;;  %5396 = vmatprep.subr.bf16.mxu1 %v5773_v22  ;;  %v5806_v15 = vld [vmem:[%s7290_s4 + $0x638] sm:$0xff]   ;;  %v2847_v25 = vmax.f32 %v2749_v20, 0.0 }
 0x87a   :  { %v2845_v22 = vmax.f32 %v2708_v44, 0.0  ;;  %v2866_v33 = vpack.c.bf16 %v2850_v40, %v2850_v40 }
 0x87c   :  { %5375 = vmatpush3.bf16.msra.mxu0 %v5774_v5  ;;  %5397 = vmatpush3.bf16.msra.mxu1 %v5775_v41  ;;  %v2852_v5 = vmax.f32 %v2833_v45, 0.0  ;;  %v5810_v41 = vld [vmem:[%s7290_s4 + $0x700] sm:$0xff]   ;;  %v2861_v26 = vpack.c.bf16 %v2845_v22, %v2845_v22 }
 0x87d   :  { %5404 = vmatprep.subr.bf16.mxu0 %v5776_v28  ;;  %5426 = vmatprep.subr.bf16.mxu1 %v5777_v32  ;;  %v2863_v28 = vpack.c.bf16 %v2847_v25, %v2847_v25  ;;  %v5812_v32 = vld [vmem:[%s7290_s4 + $0x748] sm:$0xff]  }
 0x87f   :  { %4007 = vmatmul.mubr.bf16.vlgmr.msra.gmra.mrb[56].mxu0 %v2857_v37  ;;  %4047 = vmatmul.mubr.bf16.vlgmr.msra.gmra.mrb[56].mxu1 %v2859_v39  ;;  %v5814_v37 = vld [vmem:[%s7290_s4 + $0x708] sm:$0xff]  }
 0x880   :  { %5405 = vmatpush3.bf16.msra.mxu0 %v5778_v36  ;;  %4086 = vmatprep.mubr.bf16.mxu0 %v2862_v47  ;;  %v2868_v36 = vpack.c.bf16 %v2852_v5, %v2852_v5  ;;  %v5815_v39 = vld [vmem:[%s7290_s4 + $0x788] sm:$0xff]   ;;  %v5817_v47 = vld [vmem:[%s7290_s4 + $0x7d0] sm:$0xff]  }
 0x881   :  { %5427 = vmatpush3.bf16.msra.mxu1 %v5779_v10  ;;  %4126 = vmatprep.mubr.bf16.mxu1 %v2864_v52  ;;  %v5816_v10 = vld [vmem:[%s7290_s4 + $0x750] sm:$0xff]   ;;  %v5820_v52 = vld [vmem:[%s7290_s4 + $0x758] sm:$0xff]  }
 0x882   :  { %5406 = vmatprep.subr.bf16.mxu0 %v5780_v48  ;;  %5428 = vmatprep.subr.bf16.mxu1 %v5781_v51  ;;  %v5818_v48 = vld [vmem:[%s7290_s4 + $0x710] sm:$0xff]  }
 0x883   :  { %v5819_v51 = vld [vmem:[%s7290_s4 + $0x790] sm:$0xff]  }
 0x884   :  { %5407 = vmatpush3.bf16.msra.mxu0 %v5782_v53  ;;  %v5821_v53 = vld [vmem:[%s7290_s4 + $0x7d8] sm:$0xff]  }
 0x885   :  { %5429 = vmatpush3.bf16.msra.mxu1 %v5783_v54  ;;  %5408 = vmatprep.subr.bf16.mxu0 %v5784_v55  ;;  %v5822_v54 = vld [vmem:[%s7290_s4 + $0x718] sm:$0xff]  }
 0x886   :  { %5430 = vmatprep.subr.bf16.mxu1 %v5785_v29  ;;  %v5823_v55 = vld [vmem:[%s7290_s4 + $0x798] sm:$0xff]   ;;  %v5824_v29 = vld [vmem:[%s7290_s4 + $0x760] sm:$0xff]  }
 0x888   :  { %5409 = vmatpush3.bf16.msra.mxu0 %v5786_v56  ;;  %v5825_v56 = vld [vmem:[%s7290_s4 + $0x7e0] sm:$0xff]  }
 0x889   :  { %5431 = vmatpush3.bf16.msra.mxu1 %v5787_v13  ;;  %5410 = vmatprep.subr.bf16.mxu0 %v5788_v58  ;;  %v5826_v13 = vld [vmem:[%s7290_s4 + $0x720] sm:$0xff]  }
 0x88a   :  { %5432 = vmatprep.subr.bf16.mxu1 %v5789_v38  ;;  %v5827_v58 = vld [vmem:[%s7290_s4 + $0x7a0] sm:$0xff]   ;;  %v5828_v38 = vld [vmem:[%s7290_s4 + $0x768] sm:$0xff]  }
 0x88c   :  { %5411 = vmatpush3.bf16.msra.mxu0 %v5790_v60  ;;  %v5829_v60 = vld [vmem:[%s7290_s4 + $0x7e8] sm:$0xff]  }
 0x88d   :  { %5433 = vmatpush3.bf16.msra.mxu1 %v5791_v61  ;;  %5412 = vmatprep.subr.bf16.mxu0 %v5792_v62  ;;  %v5830_v61 = vld [vmem:[%s7290_s4 + $0x728] sm:$0xff]   ;;  %v2317_v62 = vrot.slane %v6916_v57, %v6308_v35  ;;  %v5834_v35 = vld [vmem:[%s7290_s4 + $0x730] sm:$0xff]  }
 0x88e   :  { %5434 = vmatprep.subr.bf16.mxu1 %v5793_v0  ;;  %v5831_v0 = vld [vmem:[%s7290_s4 + $0x7a8] sm:$0xff]  }
 0x88f   :  { %v2790_v57 = vadd.f32 %v6932_v63, %v2317_v62  ;;  %v5838_v63 = vld [vmem:[%s7290_s4 + $0x738] sm:$0xff]  }
 0x890   :  { %5413 = vmatpush3.bf16.msra.mxu0 %v5794_v43  ;;  %v5832_v43 = vld [vmem:[%s7290_s4 + $0x770] sm:$0xff]  }
 0x891   :  { %5435 = vmatpush3.bf16.msra.mxu1 %v5795_v16  ;;  %5414 = vmatprep.subr.bf16.mxu0 %v5796_v1  ;;  %v5833_v16 = vld [vmem:[%s7290_s4 + $0x7f0] sm:$0xff]   ;;  %v2849_v59 = vmax.f32 %v2790_v57, 0.0 }
 0x892   :  { %5436 = vmatprep.subr.bf16.mxu1 %v5797_v2  ;;  %v5835_v1 = vld [vmem:[%s7290_s4 + $0x7b0] sm:$0xff]   ;;  %v5836_v2 = vld [vmem:[%s7290_s4 + $0x778] sm:$0xff]  }
 0x893   :  { %v2865_v7 = vpack.c.bf16 %v2849_v59, %v2849_v59 }
 0x894   :  { %5415 = vmatpush3.bf16.msra.mxu0 %v5798_v17  ;;  %v5837_v17 = vld [vmem:[%s7290_s4 + $0x7f8] sm:$0xff]  }
 0x895   :  { %5437 = vmatpush3.bf16.msra.mxu1 %v5799_v4  ;;  %5416 = vmatprep.subr.bf16.mxu0 %v5800_v42  ;;  %v5839_v4 = vld [vmem:[%s7290_s4 + $0x7b8] sm:$0xff]   ;;  %v2851_v42 = vmax.f32 %v6934_v49, 0.0  ;;  %v2134_v49 = vld [vmem:[%s7287_s1 + $0xa3] ss:$0 sm:$0xff] }
 0x896   :  { %5438 = vmatprep.subr.bf16.mxu1 %v5801_v9 }
 0x897   :  { %v2867_v9 = vpack.c.bf16 %v2851_v42, %v2851_v42  ;;  %v4233_v42 = vld [vmem:[%s7287_s1 + $0xc8] sm:$0xff] }
 0x898   :  { %5417 = vmatpush3.bf16.msra.mxu0 %v5802_v24 }
 0x899   :  { %5439 = vmatpush3.bf16.msra.mxu1 %v5803_v12  ;;  %5418 = vmatprep.subr.bf16.mxu0 %v5804_v30 }
 0x89a   :  { %5440 = vmatprep.subr.bf16.mxu1 %v5805_v31 }
 0x89c   :  { %5419 = vmatpush3.bf16.msra.mxu0 %v5806_v15 }
 0x89d   :  { %5441 = vmatpush3.bf16.msra.mxu1 %v5807_v46  ;;  %5448 = vmatprep.subr.bf16.mxu0 %v5808_v23 }
 0x89e   :  { %5470 = vmatprep.subr.bf16.mxu1 %v5809_v50 }
 0x89f   :  { %4087 = vmatmul.mubr.bf16.vlgmr.msra.gmra.mrb[60].mxu0 %v2861_v26 }
 0x8a0   :  { %4127 = vmatmul.mubr.bf16.vlgmr.msra.gmra.mrb[60].mxu1 %v2863_v28  ;;  %5449 = vmatpush3.bf16.msra.mxu0 %v5810_v41 }
 0x8a1   :  { %4166 = vmatprep.mubr.bf16.mxu0 %v2866_v33  ;;  %5471 = vmatpush3.bf16.msra.mxu1 %v5811_v27 }
 0x8a2   :  { %4206 = vmatprep.mubr.bf16.mxu1 %v2868_v36  ;;  %5450 = vmatprep.subr.bf16.mxu0 %v5812_v32 }
 0x8a3   :  { %5472 = vmatprep.subr.bf16.mxu1 %v5813_v34 }
 0x8a4   :  { %5451 = vmatpush3.bf16.msra.mxu0 %v5814_v37 }
 0x8a5   :  { %5473 = vmatpush3.bf16.msra.mxu1 %v5815_v39  ;;  %5452 = vmatprep.subr.bf16.mxu0 %v5816_v10 }
 0x8a6   :  { %5474 = vmatprep.subr.bf16.mxu1 %v5817_v47 }
 0x8a8   :  { %5453 = vmatpush3.bf16.msra.mxu0 %v5818_v48 }
 0x8a9   :  { %5475 = vmatpush3.bf16.msra.mxu1 %v5819_v51  ;;  %5454 = vmatprep.subr.bf16.mxu0 %v5820_v52 }
 0x8aa   :  { %5476 = vmatprep.subr.bf16.mxu1 %v5821_v53 }
 0x8ac   :  { %5455 = vmatpush3.bf16.msra.mxu0 %v5822_v54 }
 0x8ad   :  { %5477 = vmatpush3.bf16.msra.mxu1 %v5823_v55  ;;  %5456 = vmatprep.subr.bf16.mxu0 %v5824_v29 }
 0x8ae   :  { %5478 = vmatprep.subr.bf16.mxu1 %v5825_v56 }
 0x8b0   :  { %5457 = vmatpush3.bf16.msra.mxu0 %v5826_v13 }
 0x8b1   :  { %5479 = vmatpush3.bf16.msra.mxu1 %v5827_v58  ;;  %5458 = vmatprep.subr.bf16.mxu0 %v5828_v38 }
 0x8b2   :  { %5480 = vmatprep.subr.bf16.mxu1 %v5829_v60 }
 0x8b4   :  { %5459 = vmatpush3.bf16.msra.mxu0 %v5830_v61 }
 0x8b5   :  { %5481 = vmatpush3.bf16.msra.mxu1 %v5831_v0  ;;  %5460 = vmatprep.subr.bf16.mxu0 %v5832_v43 }
 0x8b6   :  { %5482 = vmatprep.subr.bf16.mxu1 %v5833_v16 }
 0x8b8   :  { %5461 = vmatpush3.bf16.msra.mxu0 %v5834_v35 }
 0x8b9   :  { %5483 = vmatpush3.bf16.msra.mxu1 %v5835_v1  ;;  %5462 = vmatprep.subr.bf16.mxu0 %v5836_v2 }
 0x8ba   :  { %5484 = vmatprep.subr.bf16.mxu1 %v5837_v17 }
 0x8bc   :  { %5463 = vmatpush3.bf16.msra.mxu0 %v5838_v63 }
 0x8bd   :  { %5485 = vmatpush3.bf16.msra.mxu1 %v5839_v4  ;;  %v4231_v4 = vld [vmem:[%s7287_s1 + $0xb8] sm:$0xff] }
 0x8be   :  { %5562 = vmatprep.subr.bf16.mxu1 %v5896_v3 }
 0x8bf   :  { %4167 = vmatmul.mubr.bf16.vlgmr.msra.gmra.mrb[64].mxu0 %v2865_v7  ;;  %v5554_v7 = vpack.c.bf16 %v4233_v42, %v4231_v4 }
 0x8c0   :  { %4207 = vmatmul.mubr.bf16.vlgmr.msra.gmra.mrb[64].mxu1 %v2867_v9  ;;  %4318 = vmatprep.mubr.f32.mxu0 %v5898_v6  ;;  %v4232_v9 = vld [vmem:[%s7287_s1 + $0xc0] sm:$0xff] }
 0x8c1   :  { %5539 = vmatprep.mubr.msk.f32.mxu1 %vm5897_vm0, %v5898_v6  ;;  %5555 = vmatprep.subr.bf16.mxu0 %v5554_v7 }
 0x932   :  { %v5332_v18 = vpop.f32.mrb[52].mxu0  ;;  %v5354_v19 = vpop.f32.mrb[52].mxu1 }
 0x933   :  { %v5333_v24 = vpop.f32.mrb[53].mxu0  ;;  %v5355_v44 = vpop.f32.mrb[53].mxu1 }
 0x934   :  { %v5334_v12 = vadd.f32 %v5333_v24, %v5332_v18  ;;  %v5356_v30 = vadd.f32 %v5355_v44, %v5354_v19  ;;  %v5335_v20 = vpop.f32.mrb[54].mxu0  ;;  %v5357_v31 = vpop.f32.mrb[54].mxu1  ;;  %v4235_v19 = vld [vmem:[%s7287_s1 + $0xd8] sm:$0xff]  ;;  %v4234_v24 = vld [vmem:[%s7287_s1 + $0xd0] sm:$0xff] }
 0x935   :  { %v5336_v21 = vpop.f32.mrb[55].mxu0  ;;  %v5358_v45 = vpop.f32.mrb[55].mxu1 }
 0x936   :  { %v3929_v15 = vadd.f32 %v5334_v12, %v2134_v49  ;;  %v4237_v49 = vld [vmem:[%s7287_s1 + $0xe8] sm:$0xff]  ;;  %v4236_v12 = vld [vmem:[%s7287_s1 + $0xe0] sm:$0xff] }
 0x937   :  { %v5558_v44 = vpack.c.bf16 %v4237_v49, %v4235_v19 }
 0x938   :  { %v3969_v22 = vadd.f32 %v5356_v30, %v3929_v15  ;;  %v5560_v30 = vpack.c.bf16 %v4236_v12, %v4234_v24  ;;  %v2135_v15 = vld [vmem:[%s7287_s1 + $0xa4] ss:$0 sm:$0xff] }
 0x952   :  { %v5376_v46 = vpop.f32.mrb[56].mxu0  ;;  %v5398_v23 = vpop.f32.mrb[56].mxu1 }
 0x953   :  { %v5377_v25 = vpop.f32.mrb[57].mxu0  ;;  %v5399_v6 = vpop.f32.mrb[57].mxu1 }
 0x954   :  { %v5378_v50 = vadd.f32 %v5377_v25, %v5376_v46  ;;  %v5400_v40 = vadd.f32 %v5399_v6, %v5398_v23  ;;  %v5379_v5 = vpop.f32.mrb[58].mxu0  ;;  %v5401_v41 = vpop.f32.mrb[58].mxu1  ;;  %v2136_v46 = vld [vmem:[%s7287_s1 + $0xa5] ss:$0 sm:$0xff] }
 0x955   :  { %v5380_v26 = vpop.f32.mrb[59].mxu0  ;;  %v5402_v27 = vpop.f32.mrb[59].mxu1  ;;  %v5124_v6 = vld [vmem:[%s7287_s1 + $0xf0] ss:$8 sm:$0x3] }
 0x956   :  { %v4009_v28 = vadd.f32 %v5378_v50, %v3969_v22  ;;  %v4244_v50 = vrot.slane %v5124_v6, %v6201_v11 }
 0x958   :  { %v4049_v32 = vadd.f32 %v5400_v40, %v4009_v28  ;;  %v4248_v40 = vrot.slane %v5124_v6, %v6212_v14 }
 0x972   :  { %v5420_v33 = vpop.f32.mrb[60].mxu0 }
 0x973   :  { %v5442_v34 = vpop.f32.mrb[60].mxu1  ;;  %v5421_v36 = vpop.f32.mrb[61].mxu0 }
 0x974   :  { %v5422_v37 = vadd.f32 %v5421_v36, %v5420_v33  ;;  %v5443_v39 = vpop.f32.mrb[61].mxu1  ;;  %v5423_v10 = vpop.f32.mrb[62].mxu0 }
 0x975   :  { %v5444_v47 = vadd.f32 %v5443_v39, %v5442_v34  ;;  %v5445_v48 = vpop.f32.mrb[62].mxu1  ;;  %v5424_v51 = vpop.f32.mrb[63].mxu0 }
 0x976   :  { %v4089_v52 = vadd.f32 %v5422_v37, %v4049_v32  ;;  %v5446_v53 = vpop.f32.mrb[63].mxu1 }
 0x977   :  { %v4370_v53 = vld [vmem:[%s7287_s1 + $0x100] sm:$0xff] }
 0x978   :  { %v4129_v54 = vadd.f32 %v5444_v47, %v4089_v52 }
 0x992   :  { %v5464_v55 = vpop.f32.mrb[64].mxu0 }
 0x993   :  { %v5486_v29 = vpop.f32.mrb[64].mxu1  ;;  %v5465_v56 = vpop.f32.mrb[65].mxu0 }
 0x994   :  { %v5466_v13 = vadd.f32 %v5465_v56, %v5464_v55  ;;  %v5487_v58 = vpop.f32.mrb[65].mxu1  ;;  %v5467_v38 = vpop.f32.mrb[66].mxu0  ;;  %v4372_v55 = vld [vmem:[%s7287_s1 + $0x120] sm:$0xff]  ;;  %v4373_v56 = vld [vmem:[%s7287_s1 + $0x130] sm:$0xff] }
 0x995   :  { %v5488_v60 = vadd.f32 %v5487_v58, %v5486_v29  ;;  %v5489_v61 = vpop.f32.mrb[66].mxu1  ;;  %v5468_v62 = vpop.f32.mrb[67].mxu0  ;;  %v4374_v58 = vld [vmem:[%s7287_s1 + $0x140] sm:$0xff]  ;;  %v4375_v38 = vld [vmem:[%s7287_s1 + $0x150] sm:$0xff] }
 0x996   :  { %v4169_v0 = vadd.f32 %v5466_v13, %v4129_v54  ;;  %v5490_v43 = vpop.f32.mrb[67].mxu1  ;;  %v4371_v54 = vld [vmem:[%s7287_s1 + $0x110] sm:$0xff]  ;;  %v5566_v13 = vpack.c.bf16 %v4373_v56, %v4372_v55  ;;  %v5569_v61 = vpack.c.bf16 %v4375_v38, %v4374_v58 }
 0x997   :  { %v5563_v29 = vpack.c.bf16 %v4371_v54, %v4370_v53  ;;  %v4377_v43 = vld [vmem:[%s7287_s1 + $0x170] sm:$0xff] }
 0x998   :  { %v4209_v16 = vadd.f32 %v5488_v60, %v4169_v0  ;;  %v4376_v0 = vld [vmem:[%s7287_s1 + $0x160] sm:$0xff] }
 0x999   :  { %5564 = vmatpush3.bf16.msra.mxu1 %v5563_v29 }
 0x99a   :  { %v4214_v35 = vadd.f32 %v4209_v16, %v6662_v8  ;;  %v4230_v8 = vld [vmem:[%s7287_s1 + $0xb0] sm:$0xff]  ;;  %5565 = vmatprep.subr.bf16.mxu1 %v5896_v3  ;;  %v5572_v16 = vpack.c.bf16 %v4377_v43, %v4376_v0 }
 0x99b   :  { %v5556_v18 = vpack.c.bf16 %v4232_v9, %v4230_v8 }
 0x99c   :  { %v4215_v57 = vsel %vm35_vm1, %v4214_v35, 0.0 }
 0x99d   :  { %4216 = vadd.xlane.f32.xlu0 %v4215_v57  ;;  %5557 = vmatpush1.bf16.msra.mxu0 %v5556_v18 }
 0x99e   :  { %5559 = vmatprep.subr.bf16.mxu0 %v5558_v44  ;;  %5567 = vmatpush3.bf16.msra.mxu1 %v5566_v13 }
 0x99f   :  { %5568 = vmatprep.subr.bf16.mxu1 %v5896_v3 }
 0x9a1   :  { %5561 = vmatpush1.bf16.msra.mxu0 %v5560_v30 }
 0x9a2   :  { %5570 = vmatpush3.bf16.msra.mxu1 %v5569_v61 }
 0x9a3   :  { %5571 = vmatprep.subr.bf16.mxu1 %v5896_v3 }
 0x9a6   :  { %5573 = vmatpush3.bf16.msra.mxu1 %v5572_v16 }
 0xa2a   :  { %v4217_v1 = vpop.xlane.xlu0 %4216 }
 0xa2b   :  { %v4218_v2 = vmul.f32 0.03125, %v4217_v1 }
 0xa2d   :  { %v4219_v17 = vsub.f32 %v4214_v35, %v4218_v2 }
 0xa2f   :  { %v4220_v63 = vmul.f32 %v4219_v17, %v4219_v17 }
 0xa31   :  { %v4221_v59 = vsel %vm35_vm1, %v4220_v63, 0.0 }
 0xa32   :  { %4222 = vadd.xlane.f32.xlu1 %v4221_v59  ;;  %v4378_v59 = vld [vmem:[%s7287_s1 + $0x180] ss:$0 sm:$0xff]  ;;  %s5904_s1 = smov 80  }
 0xabf   :  { %v4223_v20 = vpop.xlane.xlu1 %4222 }
 0xac0   :  { %v4224_v31 = vmul.f32 0.03125, %v4223_v20 }
 0xac2   :  { %v4225_v21 = vadd.f32 1e-05, %v4224_v31 }
 0xac4   :  { %5846 = vrsqrt.f32 %v4225_v21 }
 0xace   :  { %v5847_v45 = vpop.eup %5846 }
 0xacf   :  { %v4227_v22 = vmul.f32 %v5847_v45, %v4219_v17 }
 0xad1   :  { %v4228_v23 = vmul.f32 %v4227_v22, %v2135_v15 }
 0xad3   :  { %v4229_v25 = vadd.f32 %v4228_v23, %v2136_v46 }
 0xad5   :  { %5125 = vmatmul.mubr.msk.f32.vlgmr.msra.gmra.mrb[2].mxu0 %vm35_vm1, %v4229_v25 }
 0xba8   :  { %v4320_v5 = vpop.f32.mrb[2].mxu0 }
 0xba9   :  { %v4321_v41 = vadd.f32 %v4320_v5, %v4244_v50  ;;  %v4322_v26 = vpop.f32.mrb[3].mxu0 }
 0xbaa   :  { %v4323_v27 = vadd.f32 %v4322_v26, %v4248_v40 }
 0xbab   :  { %5848 = vtanh.f32 %v4321_v41  ;;  %v5126_v33 = vmul.f32 -1.442695, %v4321_v41 }
 0xbac   :  { %5850 = vtanh.f32 %v4323_v27  ;;  %v5127_v34 = vmul.f32 -1.442695, %v4323_v27 }
 0xbad   :  { %5852 = vpow2.f32 %v5126_v33 }
 0xbae   :  { %5854 = vpow2.f32 %v5127_v34 }
 0xbb5   :  { %v5849_v28 = vpop.eup %5848 }
 0xbb6   :  { %v5851_v32 = vpop.eup %5850  ;;  %4333 = vrot.lane.b32.xlu0 %v5849_v28, %s5900_s7 }
 0xbb7   :  { %4351 = vrot.lane.b32.xlu1 %v5851_v32, %s5900_s7  ;;  %v5853_v11 = vpop.eup %5852 }
 0xbb8   :  { %v5855_v36 = vpop.eup %5854  ;;  %v4328_v14 = vadd.f32 1.0, %v5853_v11 }
 0xbb9   :  { %v4346_v37 = vadd.f32 1.0, %v5855_v36 }
 0xbba   :  { %5856 = vrcp.f32 %v4328_v14 }
 0xbbb   :  { %5858 = vrcp.f32 %v4346_v37 }
 0xbc4   :  { %v5857_v39 = vpop.eup %5856 }
 0xbc5   :  { %v5859_v51 = vpop.eup %5858 }
 0xc28   :  { %v4334_v10 = vpop.permute.xlu0 %4333 }
 0xc29   :  { %v4336_v47 = vmul.f32 %v5857_v39, %v4334_v10  ;;  %v4352_v48 = vpop.permute.xlu1 %4351 }
 0xc2a   :  { %v4354_v52 = vmul.f32 %v5859_v51, %v4352_v48 }
 0xc2b   :  { %5860 = vtanh.f32 %v4336_v47 }
 0xc2c   :  { %5862 = vtanh.f32 %v4354_v52 }
 0xc35   :  { %v5861_v60 = vpop.eup %5860 }
 0xc36   :  { %4339 = vrot.lane.b32.xlu1 %v5861_v60, %s5901_s19  ;;  %v5863_v62 = vpop.eup %5862 }
 0xc3a   :  { %4357 = vrot.lane.b32.xlu1 %v5863_v62, %s5901_s19 }
 0xca8   :  { %v4340_v35 = vpop.permute.xlu1 %4339 }
 0xca9   :  { %v4342_v57 = vmul.f32 %v5857_v39, %v4340_v35 }
 0xcab   :  { %4362 = vrot.lane.b32.xlu0 %v4342_v57, %s5902_s24 }
 0xcac   :  { %v4358_v1 = vpop.permute.xlu1 %4357 }
 0xcad   :  { %v4360_v2 = vmul.f32 %v5859_v51, %v4358_v1 }
 0xcaf   :  { %4366 = vrot.lane.b32.xlu1 %v4360_v2, %s5900_s7 }
 0xd1d   :  { %v4363_v3 = vpop.permute.xlu0 %4362 }
 0xd21   :  { %v4367_v17 = vpop.permute.xlu1 %4366 }
 0xd22   :  { %v4369_v63 = vsel %vm35_vm1, %v4363_v3, %v4367_v17 }
 0xd23   :  { %5540 = vmatmul.mubr.msk.f32.vlgmr.msra.gmra.mrb[34].mxu1 %vm4379_vm2, %v4369_v63 }
 0xdf6   :  { %v4449_v4 = vpop.f32.mrb[34].mxu1 }
 0xdf7   :  { %v4450_v42 = vadd.f32 %v4449_v4, %v4378_v59  ;;  %v5541_v7 = vpop.f32.mrb[35].mxu1 }
 0xdf9   :  { %5864 = vtanh.f32 %v4450_v42  ;;  %v5129_v9 = vmul.f32 -1.442695, %v4450_v42 }
 0xdfb   :  { %5866 = vpow2.f32 %v5129_v9 }
 0xe03   :  { %v5865_v8 = vpop.eup %5864 }
 0xe04   :  { %4461 = vrot.lane.b32.xlu0 %v5865_v8, %s5901_s19 }
 0xe05   :  { %v5867_v18 = vpop.eup %5866 }
 0xe06   :  { %v4456_v19 = vadd.f32 1.0, %v5867_v18 }
 0xe08   :  { %5868 = vrcp.f32 %v4456_v19 }
 0xe12   :  { %v5869_v49 = vpop.eup %5868 }
 0xe76   :  { %v4462_v24 = vpop.permute.xlu0 %4461 }
 0xe77   :  { %v4464_v44 = vmul.f32 %v5869_v49, %v4462_v24 }
 0xe79   :  { %5870 = vtanh.f32 %v4464_v44 }
 0xe83   :  { %v5871_v12 = vpop.eup %5870 }
 0xe84   :  { %4467 = vrot.lane.b32.xlu1 %v5871_v12, %s5903_s27 }
 0xef6   :  { %v4468_v30 = vpop.permute.xlu1 %4467 }
 0xef7   :  { %v4470_v20 = vmul.f32 %v5869_v49, %v4468_v30 }
 0xef9   :  { %4475 = vrot.lane.b32.xlu1 %v4470_v20, %s5902_s24  ;;  %4472 = vrot.lane.b32.xlu0 %v4470_v20, %s5904_s1 }
 0xf6b   :  { %v4476_v31 = vpop.permute.xlu1 %4475  ;;  %v4473_v21 = vpop.permute.xlu0 %4472 }
 0xf6c   :  { %v4479_v45 = vsel %vm4478_vm3, %v4473_v21, %v4476_v31 }
 0xf6d   :  { %4480 = vst.msk [vmem:[#allocation2] sm:$0xff] %vm35_vm1, %v4479_v45 }
 0xf6e   :  { %5883 = shalt.err (!%p5880_p4)
}
 0xf6f   :  { %s5884_s6 = scalar_lea.hbm %s7291_s5, 128 }
 0xf70   :  { %p5885_p5 = scmp.ne.s32.totalorder %s7291_s5, %s5884_s6  ;;  %p5888_p6 = scmp.lt.u32.totalorder %s5884_s6, %s7291_s5 }
 0xf72   :  { %p5890_p7 = pnand %p5888_p6, %p5885_p5 }
 0xf74   :  { %5893 = shalt.err (!%p5890_p7)
}
 0xf75   :  { %4490 = dma.vmem_to_hbm [thread:$0]  %s4488_s28, 128, %s7291_s5, [#allocation3]  }
 0xf76   :  { %5894 = dma.done.wait [#allocation3], 128  }
 0xf77   :  { %5895 = vsyncadd [#allocation3], 4294967168 }
 0xf78   :  { %4494 = vsyncpa [#allocation3], 1 }

</bundles_post_ra>
